<compile_context>
chip_gen: v7x
topology: tpu7x:2x2x1
jax: 0.10.0
libtpu: 0.0.40
codegen_flags: <defaults>
</compile_context>

<pallas_src>
import functools

import numpy as np
import jax
import jax.numpy as jnp
from jax import lax
from jax.experimental import pallas as pl
from jax.experimental.pallas import tpu as pltpu

_BN_EPS = 1e-5
_LANE = 128


def _round_up(x, m):
    return -(-x // m) * m


# ------------------------------ Pallas kernel ------------------------------ #

def _bn_relu(x, gamma, beta):
    """Training-mode BatchNorm over rows, folded to scale/shift, then ReLU.

    One-pass sum / sum-of-squares in f32, biased variance (matches the
    nn.BatchNorm2d training-mode forward).  Padded channels have
    gamma = beta = 0, so they stay identically zero through BN + ReLU.
    """
    inv_m = 1.0 / x.shape[0]
    s = jnp.sum(x, axis=0, keepdims=True)
    sq = jnp.sum(x * x, axis=0, keepdims=True)
    mean = s * inv_m
    var = jnp.maximum(sq * inv_m - mean * mean, 0.0)      # biased variance
    scale = gamma * lax.rsqrt(var + _BN_EPS)              # rsqrt -> EUP slot
    shift = beta - mean * scale
    return jnp.maximum(x * scale + shift, 0.0)            # 2 VPU ops / element


def _block_first_kernel(p1_ref, w1_ref, g1_ref, b1_ref,
                        sel2_ref, w2_ref, g2_ref, b2_ref, *rest,
                        n_taps, cout, pooling):
    """Fused Block_First forward.

    p1_ref:   (M1, 128)          layer-1 im2col patches, bf16, K zero-padded
    w1_ref:   (128, 128)         conv1 weights, bf16, zero-padded
    g1/b1:    (1, 128)           BN1 gamma/beta, f32, zero-padded
    sel2_ref: (25*M2, M1)        stacked 0/1 row-gather rows, bf16 (exact);
                                 row t*M2+m2 gathers tap t for output m2
    w2_ref:   (n_groups*128,128) compact tap-stacked conv2 weights, bf16
    g2/b2:    (1, 128)
    pool_ref: (4*M3, M2)         stacked 0/1 pool-candidate selectors, f32
    o_ref:    (Mout, 128)        lane-dense f32 output slab
    """
    if pooling:
        pool_ref, o_ref = rest
    else:
        (o_ref,) = rest

    f32 = jnp.float32
    bf16 = jnp.bfloat16

    # ---- conv1 (one MXU matmul) + BN1 + ReLU; a1 stays VMEM/vreg resident. --
    acc1 = jnp.dot(p1_ref[...], w1_ref[...], preferred_element_type=f32)
    a1 = _bn_relu(acc1, g1_ref[...], b1_ref[...])          # (M1, 128) f32

    # ---- conv2 ------------------------------------------------------------ #
    # Stage 1: all 25 tap row-gathers in ONE MXU pass (zero gather rows
    # implement conv2's spatial zero padding).
    lanes = w1_ref.shape[1]                                # 128
    m2 = sel2_ref.shape[0] // n_taps
    rows = jnp.dot(sel2_ref[...], a1.astype(bf16),
                   preferred_element_type=f32)             # (25*M2, 128)

    # Stage 2: lane re-pack.  a1 has only `cout` (=8) live lanes, so
    # taps_per_group (=16) taps pack into one 128-lane group; tap (g, j) lands
    # on lanes [g*128 + j*cout, g*128 + (j+1)*cout).  Each jnp.roll is a lane
    # rotation (XLU) and exact because the rolled-in lanes are zero; the adds
    # merge disjoint stripes.
    taps_per_group = lanes // cout
    n_groups = -(-n_taps // taps_per_group)
    groups = []
    for g in range(n_groups):
        acc = None
        for j in range(taps_per_group):
            t = g * taps_per_group + j
            if t >= n_taps:
                break
            blk = rows[t * m2:(t + 1) * m2, :]             # static vreg slice
            blk = blk if j == 0 else jnp.roll(blk, j * cout, axis=1)
            acc = blk if acc is None else acc + blk
        groups.append(acc)
    p2 = jnp.concatenate(groups, axis=1) if n_groups > 1 else groups[0]

    # Stage 3: ONE matmul against the compact tap-stacked conv2 weight.
    acc2 = jnp.dot(p2.astype(bf16), w2_ref[...], preferred_element_type=f32)
    a2 = _bn_relu(acc2, g2_ref[...], b2_ref[...])          # (M2, 128) f32
    # (the extra F.relu in the PyTorch forward is idempotent after BN2+ReLU)

    # ---- 2x2 maxpool: one stacked-selector matmul + 3 elementwise maxes. --- #
    if pooling:
        cand = jnp.dot(pool_ref[...], a2, preferred_element_type=f32)
        m3 = cand.shape[0] // 4
        c0, c1 = cand[0 * m3:1 * m3], cand[1 * m3:2 * m3]
        c2, c3 = cand[2 * m3:3 * m3], cand[3 * m3:4 * m3]
        o_ref[...] = jnp.maximum(jnp.maximum(c0, c1), jnp.maximum(c2, c3))
    else:
        o_ref[...] = a2


# --------------------------- wrapper-side helpers --------------------------- #

def _im2col_nhwc(x_nhwc, kh, kw, stride, pad):
    """(N*Ho*Wo, kh*kw*C) patches, (kh, kw, c) column order.  Fused by XLA."""
    N, H, W, C = x_nhwc.shape
    Ho = (H + 2 * pad - kh) // stride + 1
    Wo = (W + 2 * pad - kw) // stride + 1
    xp = jnp.pad(x_nhwc, ((0, 0), (pad, pad), (pad, pad), (0, 0)))
    cols = []
    for ih in range(kh):
        for iw in range(kw):
            cols.append(xp[:, ih:ih + stride * Ho:stride,
                           iw:iw + stride * Wo:stride, :])
    patches = jnp.stack(cols, axis=3).reshape(N * Ho * Wo, kh * kw * C)
    return patches, Ho, Wo


def _conv_tap_gathers(N, Hi, Wi, Ho, Wo, KH, KW, stride, pad):
    """0/1 matrices G[t] with (G[t] @ act_rows) = tap-t shifted rows."""
    G = np.zeros((KH * KW, N * Ho * Wo, N * Hi * Wi), np.float32)
    for n in range(N):
        for ho in range(Ho):
            for wo in range(Wo):
                m = (n * Ho + ho) * Wo + wo
                for ih in range(KH):
                    for iw in range(KW):
                        hi = ho * stride + ih - pad
                        wi = wo * stride + iw - pad
                        if 0 <= hi < Hi and 0 <= wi < Wi:
                            G[ih * KW + iw, m, (n * Hi + hi) * Wi + wi] = 1.0
    return G


def _pool_selectors(N, Hi, Wi):
    """0/1 matrices P[j] selecting the j-th candidate of each 2x2 window."""
    Ho, Wo = Hi // 2, Wi // 2
    P = np.zeros((4, N * Ho * Wo, N * Hi * Wi), np.float32)
    for n in range(N):
        for ho in range(Ho):
            for wo in range(Wo):
                m = (n * Ho + ho) * Wo + wo
                for dh in range(2):
                    for dw in range(2):
                        P[dh * 2 + dw, m,
                          (n * Hi + 2 * ho + dh) * Wi + 2 * wo + dw] = 1.0
    return P


@functools.partial(jax.jit, static_argnames=("pooling",))
def block_first_forward(x_nchw, params, pooling=True):
    w1, w2 = params["w1"], params["w2"]
    g1, b1, g2, b2 = params["g1"], params["b1"], params["g2"], params["b2"]
    N, Cin, H, W = x_nchw.shape
    Cout, _, KH, KW = w1.shape
    stride, pad = 2, 2
    n_taps = KH * KW

    cpad = _round_up(Cout, _LANE)                 # lane-dense output channels
    x = jnp.transpose(x_nchw, (0, 2, 3, 1))       # NCHW -> NHWC

    # Layer-1 im2col (only HBM-side patch materialization in the block), bf16.
    patches1, Ho1, Wo1 = _im2col_nhwc(x, KH, KW, stride, pad)
    k1 = KH * KW * Cin
    kpad1 = _round_up(k1, _LANE)
    patches1 = jnp.pad(patches1, ((0, 0), (0, kpad1 - k1))).astype(jnp.bfloat16)

    # conv1 weights: OIHW -> (KH*KW*Cin, Cout), zero-padded, bf16.
    w1_mat = jnp.transpose(w1, (2, 3, 1, 0)).reshape(k1, Cout)
    w1_mat = jnp.pad(w1_mat, ((0, kpad1 - k1), (0, cpad - Cout))).astype(jnp.bfloat16)

    # conv2 constants.
    Ho2 = (Ho1 + 2 * pad - KH) // stride + 1
    Wo2 = (Wo1 + 2 * pad - KW) // stride + 1
    m2 = N * Ho2 * Wo2

    # Stacked 0/1 row-gather matrix (exact in bf16).
    # TODO(synk): this constant is O(N^2) in batch; for large N build
    # per-image selectors and put N on a "parallel" grid axis (BN stats then
    # need a cross-tile two-pass sum/sumsq reduction), or replace the gather
    # matmul with strided in-kernel row selection of a spatially padded a1.
    sel2 = _conv_tap_gathers(N, Ho1, Wo1, Ho2, Wo2, KH, KW, stride, pad)
    sel2_stacked = jnp.asarray(
        sel2.reshape(n_taps * m2, N * Ho1 * Wo1), jnp.bfloat16)

    # Compact tap-stacked conv2 weight, (n_groups*128, cpad):
    #   row g*128 + j*Cout + c  <->  tap t = g*taps_per_group + j, in-chan c.
    taps_per_group = _LANE // Cout
    n_groups = -(-n_taps // taps_per_group)
    w2_k = jnp.transpose(w2, (2, 3, 1, 0)).reshape(n_taps, Cout, Cout)  # (t,c,o)
    w2_k = jnp.pad(w2_k, ((0, n_groups * taps_per_group - n_taps), (0, 0), (0, 0)))
    w2_g = w2_k.reshape(n_groups, taps_per_group * Cout, Cout)
    w2_g = jnp.pad(w2_g, ((0, 0), (0, _LANE - taps_per_group * Cout),
                          (0, cpad - Cout)))
    w2_mat = w2_g.reshape(n_groups * _LANE, cpad).astype(jnp.bfloat16)

    def pad_cb(v):
        return jnp.pad(v.reshape(1, Cout), ((0, 0), (0, cpad - Cout)))

    inputs = [patches1, w1_mat, pad_cb(g1), pad_cb(b1),
              sel2_stacked, w2_mat, pad_cb(g2), pad_cb(b2)]
    if pooling:
        ho_out, wo_out = Ho2 // 2, Wo2 // 2
        psel = _pool_selectors(N, Ho2, Wo2)
        inputs.append(jnp.asarray(
            psel.reshape(4 * N * ho_out * wo_out, m2), jnp.float32))
    else:
        ho_out, wo_out = Ho2, Wo2
    m_out = N * ho_out * wo_out

    # Gridless whole-array-VMEM call: every operand is now < ~0.2 MiB, so one
    # DMA each and the inter-layer activation never leaves VMEM.  For big
    # N/H/W: add an M-row grid axis marked "parallel" (shards across v7x's
    # 2 TCs), size tiles against 64 MiB VMEM (v7x), and make BN a two-pass
    # cross-tile sum/sumsq reduction.
    vmem = pl.BlockSpec(memory_space=pltpu.MemorySpace.VMEM)
    out = pl.pallas_call(
        functools.partial(_block_first_kernel, n_taps=n_taps, cout=Cout,
                          pooling=pooling),
        out_shape=jax.ShapeDtypeStruct((m_out, cpad), jnp.float32),
        in_specs=[vmem] * len(inputs),
        out_specs=vmem,
        compiler_params=pltpu.CompilerParams(vmem_limit_bytes=32 * 1024 * 1024),
    )(*inputs)

    # Lane-dense (m_out, 128) slab -> NCHW, dropping the channel padding.
    out = out[:, :Cout].reshape(N, ho_out, wo_out, Cout)
    return jnp.transpose(out, (0, 3, 1, 2))


# ------------------------- pure-JAX references (check) ---------------------- #

def reference_forward(x_nchw, params, *, matmul_dtype=jnp.float32):
    """Reference forward.  matmul_dtype=bfloat16 reproduces exactly the bf16
    input rounding the kernel applies (accumulation and BN stats stay f32);
    matmul_dtype=float32 is the exact f32 module."""
    def cast(v):
        return v.astype(matmul_dtype).astype(jnp.float32)

    def conv(x, w):
        return lax.conv_general_dilated(
            cast(x), cast(w), window_strides=(2, 2), padding=((2, 2), (2, 2)),
            dimension_numbers=("NCHW", "OIHW", "NCHW"),
            precision=lax.Precision.HIGHEST)

    def bn_relu(x, g, b):
        mean = jnp.mean(x, axis=(0, 2, 3), keepdims=True)
        var = jnp.mean((x - mean) ** 2, axis=(0, 2, 3), keepdims=True)
        y = ((x - mean) * lax.rsqrt(var + _BN_EPS)
             * g.reshape(1, -1, 1, 1) + b.reshape(1, -1, 1, 1))
        return jnp.maximum(y, 0.0)

    a1 = bn_relu(conv(x_nchw, params["w1"]), params["g1"], params["b1"])
    a2 = bn_relu(conv(a1, params["w2"]), params["g2"], params["b2"])
    N, C, H, W = a2.shape
    return a2.reshape(N, C, H // 2, 2, W // 2, 2).max(axis=(3, 5))


# ----------------------------------- main ----------------------------------- #

if __name__ == "__main__":
    in_channels, out_channels = 4, 8
    N, H, W = 2, 16, 16

    key = jax.random.PRNGKey(0)
    kx, kw1, kw2, kg1, kb1, kg2, kb2 = jax.random.split(key, 7)

    x = jax.random.normal(kx, (N, in_channels, H, W), jnp.float32)
    params = {
        "w1": 0.1 * jax.random.normal(kw1, (out_channels, in_channels, 5, 5), jnp.float32),
        "w2": 0.1 * jax.random.normal(kw2, (out_channels, out_channels, 5, 5), jnp.float32),
        "g1": 1.0 + 0.1 * jax.random.normal(kg1, (out_channels,), jnp.float32),
        "b1": 0.1 * jax.random.normal(kb1, (out_channels,), jnp.float32),
        "g2": 1.0 + 0.1 * jax.random.normal(kg2, (out_channels,), jnp.float32),
        "b2": 0.1 * jax.random.normal(kb2, (out_channels,), jnp.float32),
    }

    out = jax.block_until_ready(block_first_forward(x, params))
    assert out.shape == (N, out_channels, 2, 2), out.shape

    # Kernel-correctness check: reference with the SAME bf16 input rounding
    # (accumulation + BN stats in f32 in both) -> differences are only f32
    # accumulation order / one-vs-two-pass variance.
    ref_bf16 = jax.block_until_ready(
        reference_forward(x, params, matmul_dtype=jnp.bfloat16))
    err_matched = float(jnp.max(jnp.abs(out - ref_bf16)))
    assert err_matched < 1e-2, f"kernel vs bf16-matched reference: {err_matched}"

    # Precision sanity vs the exact f32 module: bf16 matmul inputs give
    # ~1e-2-scale absolute deviation on these unit-scale, BN-normalized outputs.
    ref_f32 = jax.block_until_ready(reference_forward(x, params))
    err_f32 = float(jnp.max(jnp.abs(out - ref_f32)))
    assert err_f32 < 1.5e-1, f"kernel vs f32 reference: {err_f32}"

    print("KERNEL_OK")
</pallas_src>

<mosaic_0001>
module attributes {stable_mosaic.version = 11 : i64} {
  func.func @_block_first_kernel(%arg0: memref<128x128xbf16, #tpu.memory_space<vmem>>, %arg1: memref<128x128xbf16, #tpu.memory_space<vmem>>, %arg2: memref<1x128xf32, #tpu.memory_space<vmem>>, %arg3: memref<1x128xf32, #tpu.memory_space<vmem>>, %arg4: memref<800x128xbf16, #tpu.memory_space<vmem>>, %arg5: memref<256x128xbf16, #tpu.memory_space<vmem>>, %arg6: memref<1x128xf32, #tpu.memory_space<vmem>>, %arg7: memref<1x128xf32, #tpu.memory_space<vmem>>, %arg8: memref<32x32xf32, #tpu.memory_space<vmem>>, %arg9: memref<8x128xf32, #tpu.memory_space<vmem>>) attributes {dimension_semantics = [], scalar_prefetch = 0 : i64, scratch_operands = 0 : i64, tpu.core_type = #tpu.core_type<tc>} {
    %c0 = arith.constant 0 : index
    %c0_0 = arith.constant 0 : index
    %0 = vector.load %arg0[%c0, %c0_0] : memref<128x128xbf16, #tpu.memory_space<vmem>>, vector<128x128xbf16>
    %c0_1 = arith.constant 0 : index
    %c0_2 = arith.constant 0 : index
    %1 = vector.load %arg1[%c0_1, %c0_2] : memref<128x128xbf16, #tpu.memory_space<vmem>>, vector<128x128xbf16>
    %cst = arith.constant dense<0.000000e+00> : vector<128x128xf32>
    %2 = tpu.matmul %0, %1, %cst {dimension_numbers = #tpu.dot_dimension_numbers<[1], [0], [0], [1], [0, 0, 1, 1], [], []>} : vector<128x128xbf16>, vector<128x128xbf16>, vector<128x128xf32> -> vector<128x128xf32>
    %c0_3 = arith.constant 0 : index
    %c0_4 = arith.constant 0 : index
    %3 = vector.load %arg2[%c0_3, %c0_4] : memref<1x128xf32, #tpu.memory_space<vmem>>, vector<1x128xf32>
    %c0_5 = arith.constant 0 : index
    %c0_6 = arith.constant 0 : index
    %4 = vector.load %arg3[%c0_5, %c0_6] : memref<1x128xf32, #tpu.memory_space<vmem>>, vector<1x128xf32>
    %cst_7 = arith.constant dense<0.000000e+00> : vector<128xf32>
    %5 = vector.multi_reduction <add>, %2, %cst_7 [0] : vector<128x128xf32> to vector<128xf32>
    %6 = vector.shape_cast %5 : vector<128xf32> to vector<1x128xf32>
    %7 = arith.mulf %2, %2 : vector<128x128xf32>
    %cst_8 = arith.constant dense<0.000000e+00> : vector<128xf32>
    %8 = vector.multi_reduction <add>, %7, %cst_8 [0] : vector<128x128xf32> to vector<128xf32>
    %9 = vector.shape_cast %8 : vector<128xf32> to vector<1x128xf32>
    %cst_9 = arith.constant 7.812500e-03 : f32
    %10 = vector.broadcast %cst_9 : f32 to vector<1x128xf32>
    %11 = arith.mulf %6, %10 : vector<1x128xf32>
    %cst_10 = arith.constant 7.812500e-03 : f32
    %12 = vector.broadcast %cst_10 : f32 to vector<1x128xf32>
    %13 = arith.mulf %9, %12 : vector<1x128xf32>
    %14 = arith.mulf %11, %11 : vector<1x128xf32>
    %15 = arith.subf %13, %14 : vector<1x128xf32>
    %cst_11 = arith.constant 0.000000e+00 : f32
    %16 = vector.broadcast %cst_11 : f32 to vector<1x128xf32>
    %17 = arith.maximumf %15, %16 : vector<1x128xf32>
    %cst_12 = arith.constant 9.99999974E-6 : f32
    %18 = vector.broadcast %cst_12 : f32 to vector<1x128xf32>
    %19 = arith.addf %17, %18 : vector<1x128xf32>
    %20 = math.rsqrt %19 : vector<1x128xf32>
    %21 = arith.mulf %3, %20 : vector<1x128xf32>
    %22 = arith.mulf %11, %21 : vector<1x128xf32>
    %23 = arith.subf %4, %22 : vector<1x128xf32>
    %24 = vector.broadcast %21 : vector<1x128xf32> to vector<128x128xf32>
    %25 = arith.mulf %2, %24 : vector<128x128xf32>
    %26 = vector.broadcast %23 : vector<1x128xf32> to vector<128x128xf32>
    %27 = arith.addf %25, %26 : vector<128x128xf32>
    %cst_13 = arith.constant 0.000000e+00 : f32
    %28 = vector.broadcast %cst_13 : f32 to vector<128x128xf32>
    %29 = arith.maximumf %27, %28 : vector<128x128xf32>
    %c0_14 = arith.constant 0 : index
    %c0_15 = arith.constant 0 : index
    %30 = vector.load %arg4[%c0_14, %c0_15] : memref<800x128xbf16, #tpu.memory_space<vmem>>, vector<800x128xbf16>
    %31 = arith.truncf %29 : vector<128x128xf32> to vector<128x128xbf16>
    %cst_16 = arith.constant dense<0.000000e+00> : vector<800x128xf32>
    %32 = tpu.matmul %30, %31, %cst_16 {dimension_numbers = #tpu.dot_dimension_numbers<[1], [0], [0], [1], [0, 0, 1, 1], [], []>} : vector<800x128xbf16>, vector<128x128xbf16>, vector<800x128xf32> -> vector<800x128xf32>
    %33 = vector.extract_strided_slice %32 {offsets = [0, 0], sizes = [32, 128], strides = [1, 1]} : vector<800x128xf32> to vector<32x128xf32>
    %34 = vector.extract_strided_slice %32 {offsets = [32, 0], sizes = [32, 128], strides = [1, 1]} : vector<800x128xf32> to vector<32x128xf32>
    %35 = vector.extract_strided_slice %34 {offsets = [0, 120], sizes = [32, 8], strides = [1, 1]} : vector<32x128xf32> to vector<32x8xf32>
    %36 = vector.extract_strided_slice %34 {offsets = [0, 0], sizes = [32, 120], strides = [1, 1]} : vector<32x128xf32> to vector<32x120xf32>
    %37 = tpu.concatenate %35, %36 in 1 : vector<32x8xf32>, vector<32x120xf32> -> vector<32x128xf32>
    %38 = arith.addf %33, %37 : vector<32x128xf32>
    %39 = vector.extract_strided_slice %32 {offsets = [64, 0], sizes = [32, 128], strides = [1, 1]} : vector<800x128xf32> to vector<32x128xf32>
    %40 = vector.extract_strided_slice %39 {offsets = [0, 112], sizes = [32, 16], strides = [1, 1]} : vector<32x128xf32> to vector<32x16xf32>
    %41 = vector.extract_strided_slice %39 {offsets = [0, 0], sizes = [32, 112], strides = [1, 1]} : vector<32x128xf32> to vector<32x112xf32>
    %42 = tpu.concatenate %40, %41 in 1 : vector<32x16xf32>, vector<32x112xf32> -> vector<32x128xf32>
    %43 = arith.addf %38, %42 : vector<32x128xf32>
    %44 = vector.extract_strided_slice %32 {offsets = [96, 0], sizes = [32, 128], strides = [1, 1]} : vector<800x128xf32> to vector<32x128xf32>
    %45 = vector.extract_strided_slice %44 {offsets = [0, 104], sizes = [32, 24], strides = [1, 1]} : vector<32x128xf32> to vector<32x24xf32>
    %46 = vector.extract_strided_slice %44 {offsets = [0, 0], sizes = [32, 104], strides = [1, 1]} : vector<32x128xf32> to vector<32x104xf32>
    %47 = tpu.concatenate %45, %46 in 1 : vector<32x24xf32>, vector<32x104xf32> -> vector<32x128xf32>
    %48 = arith.addf %43, %47 : vector<32x128xf32>
    %49 = vector.extract_strided_slice %32 {offsets = [128, 0], sizes = [32, 128], strides = [1, 1]} : vector<800x128xf32> to vector<32x128xf32>
    %50 = vector.extract_strided_slice %49 {offsets = [0, 96], sizes = [32, 32], strides = [1, 1]} : vector<32x128xf32> to vector<32x32xf32>
    %51 = vector.extract_strided_slice %49 {offsets = [0, 0], sizes = [32, 96], strides = [1, 1]} : vector<32x128xf32> to vector<32x96xf32>
    %52 = tpu.concatenate %50, %51 in 1 : vector<32x32xf32>, vector<32x96xf32> -> vector<32x128xf32>
    %53 = arith.addf %48, %52 : vector<32x128xf32>
    %54 = vector.extract_strided_slice %32 {offsets = [160, 0], sizes = [32, 128], strides = [1, 1]} : vector<800x128xf32> to vector<32x128xf32>
    %55 = vector.extract_strided_slice %54 {offsets = [0, 88], sizes = [32, 40], strides = [1, 1]} : vector<32x128xf32> to vector<32x40xf32>
    %56 = vector.extract_strided_slice %54 {offsets = [0, 0], sizes = [32, 88], strides = [1, 1]} : vector<32x128xf32> to vector<32x88xf32>
    %57 = tpu.concatenate %55, %56 in 1 : vector<32x40xf32>, vector<32x88xf32> -> vector<32x128xf32>
    %58 = arith.addf %53, %57 : vector<32x128xf32>
    %59 = vector.extract_strided_slice %32 {offsets = [192, 0], sizes = [32, 128], strides = [1, 1]} : vector<800x128xf32> to vector<32x128xf32>
    %60 = vector.extract_strided_slice %59 {offsets = [0, 80], sizes = [32, 48], strides = [1, 1]} : vector<32x128xf32> to vector<32x48xf32>
    %61 = vector.extract_strided_slice %59 {offsets = [0, 0], sizes = [32, 80], strides = [1, 1]} : vector<32x128xf32> to vector<32x80xf32>
    %62 = tpu.concatenate %60, %61 in 1 : vector<32x48xf32>, vector<32x80xf32> -> vector<32x128xf32>
    %63 = arith.addf %58, %62 : vector<32x128xf32>
    %64 = vector.extract_strided_slice %32 {offsets = [224, 0], sizes = [32, 128], strides = [1, 1]} : vector<800x128xf32> to vector<32x128xf32>
    %65 = vector.extract_strided_slice %64 {offsets = [0, 72], sizes = [32, 56], strides = [1, 1]} : vector<32x128xf32> to vector<32x56xf32>
    %66 = vector.extract_strided_slice %64 {offsets = [0, 0], sizes = [32, 72], strides = [1, 1]} : vector<32x128xf32> to vector<32x72xf32>
    %67 = tpu.concatenate %65, %66 in 1 : vector<32x56xf32>, vector<32x72xf32> -> vector<32x128xf32>
    %68 = arith.addf %63, %67 : vector<32x128xf32>
    %69 = vector.extract_strided_slice %32 {offsets = [256, 0], sizes = [32, 128], strides = [1, 1]} : vector<800x128xf32> to vector<32x128xf32>
    %70 = vector.extract_strided_slice %69 {offsets = [0, 64], sizes = [32, 64], strides = [1, 1]} : vector<32x128xf32> to vector<32x64xf32>
    %71 = vector.extract_strided_slice %69 {offsets = [0, 0], sizes = [32, 64], strides = [1, 1]} : vector<32x128xf32> to vector<32x64xf32>
    %72 = tpu.concatenate %70, %71 in 1 : vector<32x64xf32>, vector<32x64xf32> -> vector<32x128xf32>
    %73 = arith.addf %68, %72 : vector<32x128xf32>
    %74 = vector.extract_strided_slice %32 {offsets = [288, 0], sizes = [32, 128], strides = [1, 1]} : vector<800x128xf32> to vector<32x128xf32>
    %75 = vector.extract_strided_slice %74 {offsets = [0, 56], sizes = [32, 72], strides = [1, 1]} : vector<32x128xf32> to vector<32x72xf32>
    %76 = vector.extract_strided_slice %74 {offsets = [0, 0], sizes = [32, 56], strides = [1, 1]} : vector<32x128xf32> to vector<32x56xf32>
    %77 = tpu.concatenate %75, %76 in 1 : vector<32x72xf32>, vector<32x56xf32> -> vector<32x128xf32>
    %78 = arith.addf %73, %77 : vector<32x128xf32>
    %79 = vector.extract_strided_slice %32 {offsets = [320, 0], sizes = [32, 128], strides = [1, 1]} : vector<800x128xf32> to vector<32x128xf32>
    %80 = vector.extract_strided_slice %79 {offsets = [0, 48], sizes = [32, 80], strides = [1, 1]} : vector<32x128xf32> to vector<32x80xf32>
    %81 = vector.extract_strided_slice %79 {offsets = [0, 0], sizes = [32, 48], strides = [1, 1]} : vector<32x128xf32> to vector<32x48xf32>
    %82 = tpu.concatenate %80, %81 in 1 : vector<32x80xf32>, vector<32x48xf32> -> vector<32x128xf32>
    %83 = arith.addf %78, %82 : vector<32x128xf32>
    %84 = vector.extract_strided_slice %32 {offsets = [352, 0], sizes = [32, 128], strides = [1, 1]} : vector<800x128xf32> to vector<32x128xf32>
    %85 = vector.extract_strided_slice %84 {offsets = [0, 40], sizes = [32, 88], strides = [1, 1]} : vector<32x128xf32> to vector<32x88xf32>
    %86 = vector.extract_strided_slice %84 {offsets = [0, 0], sizes = [32, 40], strides = [1, 1]} : vector<32x128xf32> to vector<32x40xf32>
    %87 = tpu.concatenate %85, %86 in 1 : vector<32x88xf32>, vector<32x40xf32> -> vector<32x128xf32>
    %88 = arith.addf %83, %87 : vector<32x128xf32>
    %89 = vector.extract_strided_slice %32 {offsets = [384, 0], sizes = [32, 128], strides = [1, 1]} : vector<800x128xf32> to vector<32x128xf32>
    %90 = vector.extract_strided_slice %89 {offsets = [0, 32], sizes = [32, 96], strides = [1, 1]} : vector<32x128xf32> to vector<32x96xf32>
    %91 = vector.extract_strided_slice %89 {offsets = [0, 0], sizes = [32, 32], strides = [1, 1]} : vector<32x128xf32> to vector<32x32xf32>
    %92 = tpu.concatenate %90, %91 in 1 : vector<32x96xf32>, vector<32x32xf32> -> vector<32x128xf32>
    %93 = arith.addf %88, %92 : vector<32x128xf32>
    %94 = vector.extract_strided_slice %32 {offsets = [416, 0], sizes = [32, 128], strides = [1, 1]} : vector<800x128xf32> to vector<32x128xf32>
    %95 = vector.extract_strided_slice %94 {offsets = [0, 24], sizes = [32, 104], strides = [1, 1]} : vector<32x128xf32> to vector<32x104xf32>
    %96 = vector.extract_strided_slice %94 {offsets = [0, 0], sizes = [32, 24], strides = [1, 1]} : vector<32x128xf32> to vector<32x24xf32>
    %97 = tpu.concatenate %95, %96 in 1 : vector<32x104xf32>, vector<32x24xf32> -> vector<32x128xf32>
    %98 = arith.addf %93, %97 : vector<32x128xf32>
    %99 = vector.extract_strided_slice %32 {offsets = [448, 0], sizes = [32, 128], strides = [1, 1]} : vector<800x128xf32> to vector<32x128xf32>
    %100 = vector.extract_strided_slice %99 {offsets = [0, 16], sizes = [32, 112], strides = [1, 1]} : vector<32x128xf32> to vector<32x112xf32>
    %101 = vector.extract_strided_slice %99 {offsets = [0, 0], sizes = [32, 16], strides = [1, 1]} : vector<32x128xf32> to vector<32x16xf32>
    %102 = tpu.concatenate %100, %101 in 1 : vector<32x112xf32>, vector<32x16xf32> -> vector<32x128xf32>
    %103 = arith.addf %98, %102 : vector<32x128xf32>
    %104 = vector.extract_strided_slice %32 {offsets = [480, 0], sizes = [32, 128], strides = [1, 1]} : vector<800x128xf32> to vector<32x128xf32>
    %105 = vector.extract_strided_slice %104 {offsets = [0, 8], sizes = [32, 120], strides = [1, 1]} : vector<32x128xf32> to vector<32x120xf32>
    %106 = vector.extract_strided_slice %104 {offsets = [0, 0], sizes = [32, 8], strides = [1, 1]} : vector<32x128xf32> to vector<32x8xf32>
    %107 = tpu.concatenate %105, %106 in 1 : vector<32x120xf32>, vector<32x8xf32> -> vector<32x128xf32>
    %108 = arith.addf %103, %107 : vector<32x128xf32>
    %109 = vector.extract_strided_slice %32 {offsets = [512, 0], sizes = [32, 128], strides = [1, 1]} : vector<800x128xf32> to vector<32x128xf32>
    %110 = vector.extract_strided_slice %32 {offsets = [544, 0], sizes = [32, 128], strides = [1, 1]} : vector<800x128xf32> to vector<32x128xf32>
    %111 = vector.extract_strided_slice %110 {offsets = [0, 120], sizes = [32, 8], strides = [1, 1]} : vector<32x128xf32> to vector<32x8xf32>
    %112 = vector.extract_strided_slice %110 {offsets = [0, 0], sizes = [32, 120], strides = [1, 1]} : vector<32x128xf32> to vector<32x120xf32>
    %113 = tpu.concatenate %111, %112 in 1 : vector<32x8xf32>, vector<32x120xf32> -> vector<32x128xf32>
    %114 = arith.addf %109, %113 : vector<32x128xf32>
    %115 = vector.extract_strided_slice %32 {offsets = [576, 0], sizes = [32, 128], strides = [1, 1]} : vector<800x128xf32> to vector<32x128xf32>
    %116 = vector.extract_strided_slice %115 {offsets = [0, 112], sizes = [32, 16], strides = [1, 1]} : vector<32x128xf32> to vector<32x16xf32>
    %117 = vector.extract_strided_slice %115 {offsets = [0, 0], sizes = [32, 112], strides = [1, 1]} : vector<32x128xf32> to vector<32x112xf32>
    %118 = tpu.concatenate %116, %117 in 1 : vector<32x16xf32>, vector<32x112xf32> -> vector<32x128xf32>
    %119 = arith.addf %114, %118 : vector<32x128xf32>
    %120 = vector.extract_strided_slice %32 {offsets = [608, 0], sizes = [32, 128], strides = [1, 1]} : vector<800x128xf32> to vector<32x128xf32>
    %121 = vector.extract_strided_slice %120 {offsets = [0, 104], sizes = [32, 24], strides = [1, 1]} : vector<32x128xf32> to vector<32x24xf32>
    %122 = vector.extract_strided_slice %120 {offsets = [0, 0], sizes = [32, 104], strides = [1, 1]} : vector<32x128xf32> to vector<32x104xf32>
    %123 = tpu.concatenate %121, %122 in 1 : vector<32x24xf32>, vector<32x104xf32> -> vector<32x128xf32>
    %124 = arith.addf %119, %123 : vector<32x128xf32>
    %125 = vector.extract_strided_slice %32 {offsets = [640, 0], sizes = [32, 128], strides = [1, 1]} : vector<800x128xf32> to vector<32x128xf32>
    %126 = vector.extract_strided_slice %125 {offsets = [0, 96], sizes = [32, 32], strides = [1, 1]} : vector<32x128xf32> to vector<32x32xf32>
    %127 = vector.extract_strided_slice %125 {offsets = [0, 0], sizes = [32, 96], strides = [1, 1]} : vector<32x128xf32> to vector<32x96xf32>
    %128 = tpu.concatenate %126, %127 in 1 : vector<32x32xf32>, vector<32x96xf32> -> vector<32x128xf32>
    %129 = arith.addf %124, %128 : vector<32x128xf32>
    %130 = vector.extract_strided_slice %32 {offsets = [672, 0], sizes = [32, 128], strides = [1, 1]} : vector<800x128xf32> to vector<32x128xf32>
    %131 = vector.extract_strided_slice %130 {offsets = [0, 88], sizes = [32, 40], strides = [1, 1]} : vector<32x128xf32> to vector<32x40xf32>
    %132 = vector.extract_strided_slice %130 {offsets = [0, 0], sizes = [32, 88], strides = [1, 1]} : vector<32x128xf32> to vector<32x88xf32>
    %133 = tpu.concatenate %131, %132 in 1 : vector<32x40xf32>, vector<32x88xf32> -> vector<32x128xf32>
    %134 = arith.addf %129, %133 : vector<32x128xf32>
    %135 = vector.extract_strided_slice %32 {offsets = [704, 0], sizes = [32, 128], strides = [1, 1]} : vector<800x128xf32> to vector<32x128xf32>
    %136 = vector.extract_strided_slice %135 {offsets = [0, 80], sizes = [32, 48], strides = [1, 1]} : vector<32x128xf32> to vector<32x48xf32>
    %137 = vector.extract_strided_slice %135 {offsets = [0, 0], sizes = [32, 80], strides = [1, 1]} : vector<32x128xf32> to vector<32x80xf32>
    %138 = tpu.concatenate %136, %137 in 1 : vector<32x48xf32>, vector<32x80xf32> -> vector<32x128xf32>
    %139 = arith.addf %134, %138 : vector<32x128xf32>
    %140 = vector.extract_strided_slice %32 {offsets = [736, 0], sizes = [32, 128], strides = [1, 1]} : vector<800x128xf32> to vector<32x128xf32>
    %141 = vector.extract_strided_slice %140 {offsets = [0, 72], sizes = [32, 56], strides = [1, 1]} : vector<32x128xf32> to vector<32x56xf32>
    %142 = vector.extract_strided_slice %140 {offsets = [0, 0], sizes = [32, 72], strides = [1, 1]} : vector<32x128xf32> to vector<32x72xf32>
    %143 = tpu.concatenate %141, %142 in 1 : vector<32x56xf32>, vector<32x72xf32> -> vector<32x128xf32>
    %144 = arith.addf %139, %143 : vector<32x128xf32>
    %145 = vector.extract_strided_slice %32 {offsets = [768, 0], sizes = [32, 128], strides = [1, 1]} : vector<800x128xf32> to vector<32x128xf32>
    %146 = vector.extract_strided_slice %145 {offsets = [0, 64], sizes = [32, 64], strides = [1, 1]} : vector<32x128xf32> to vector<32x64xf32>
    %147 = vector.extract_strided_slice %145 {offsets = [0, 0], sizes = [32, 64], strides = [1, 1]} : vector<32x128xf32> to vector<32x64xf32>
    %148 = tpu.concatenate %146, %147 in 1 : vector<32x64xf32>, vector<32x64xf32> -> vector<32x128xf32>
    %149 = arith.addf %144, %148 : vector<32x128xf32>
    %150 = tpu.concatenate %108, %149 in 1 : vector<32x128xf32>, vector<32x128xf32> -> vector<32x256xf32>
    %151 = arith.truncf %150 : vector<32x256xf32> to vector<32x256xbf16>
    %c0_17 = arith.constant 0 : index
    %c0_18 = arith.constant 0 : index
    %152 = vector.load %arg5[%c0_17, %c0_18] : memref<256x128xbf16, #tpu.memory_space<vmem>>, vector<256x128xbf16>
    %cst_19 = arith.constant dense<0.000000e+00> : vector<32x128xf32>
    %153 = tpu.matmul %151, %152, %cst_19 {dimension_numbers = #tpu.dot_dimension_numbers<[1], [0], [0], [1], [0, 0, 1, 1], [], []>} : vector<32x256xbf16>, vector<256x128xbf16>, vector<32x128xf32> -> vector<32x128xf32>
    %c0_20 = arith.constant 0 : index
    %c0_21 = arith.constant 0 : index
    %154 = vector.load %arg6[%c0_20, %c0_21] : memref<1x128xf32, #tpu.memory_space<vmem>>, vector<1x128xf32>
    %c0_22 = arith.constant 0 : index
    %c0_23 = arith.constant 0 : index
    %155 = vector.load %arg7[%c0_22, %c0_23] : memref<1x128xf32, #tpu.memory_space<vmem>>, vector<1x128xf32>
    %cst_24 = arith.constant dense<0.000000e+00> : vector<128xf32>
    %156 = vector.multi_reduction <add>, %153, %cst_24 [0] : vector<32x128xf32> to vector<128xf32>
    %157 = vector.shape_cast %156 : vector<128xf32> to vector<1x128xf32>
    %158 = arith.mulf %153, %153 : vector<32x128xf32>
    %cst_25 = arith.constant dense<0.000000e+00> : vector<128xf32>
    %159 = vector.multi_reduction <add>, %158, %cst_25 [0] : vector<32x128xf32> to vector<128xf32>
    %160 = vector.shape_cast %159 : vector<128xf32> to vector<1x128xf32>
    %cst_26 = arith.constant 3.125000e-02 : f32
    %161 = vector.broadcast %cst_26 : f32 to vector<1x128xf32>
    %162 = arith.mulf %157, %161 : vector<1x128xf32>
    %cst_27 = arith.constant 3.125000e-02 : f32
    %163 = vector.broadcast %cst_27 : f32 to vector<1x128xf32>
    %164 = arith.mulf %160, %163 : vector<1x128xf32>
    %165 = arith.mulf %162, %162 : vector<1x128xf32>
    %166 = arith.subf %164, %165 : vector<1x128xf32>
    %cst_28 = arith.constant 0.000000e+00 : f32
    %167 = vector.broadcast %cst_28 : f32 to vector<1x128xf32>
    %168 = arith.maximumf %166, %167 : vector<1x128xf32>
    %cst_29 = arith.constant 9.99999974E-6 : f32
    %169 = vector.broadcast %cst_29 : f32 to vector<1x128xf32>
    %170 = arith.addf %168, %169 : vector<1x128xf32>
    %171 = math.rsqrt %170 : vector<1x128xf32>
    %172 = arith.mulf %154, %171 : vector<1x128xf32>
    %173 = arith.mulf %162, %172 : vector<1x128xf32>
    %174 = arith.subf %155, %173 : vector<1x128xf32>
    %175 = vector.broadcast %172 : vector<1x128xf32> to vector<32x128xf32>
    %176 = arith.mulf %153, %175 : vector<32x128xf32>
    %177 = vector.broadcast %174 : vector<1x128xf32> to vector<32x128xf32>
    %178 = arith.addf %176, %177 : vector<32x128xf32>
    %cst_30 = arith.constant 0.000000e+00 : f32
    %179 = vector.broadcast %cst_30 : f32 to vector<32x128xf32>
    %180 = arith.maximumf %178, %179 : vector<32x128xf32>
    %c0_31 = arith.constant 0 : index
    %c0_32 = arith.constant 0 : index
    %181 = vector.load %arg8[%c0_31, %c0_32] : memref<32x32xf32, #tpu.memory_space<vmem>>, vector<32x32xf32>
    %cst_33 = arith.constant dense<0.000000e+00> : vector<32x128xf32>
    %182 = tpu.matmul %181, %180, %cst_33 {dimension_numbers = #tpu.dot_dimension_numbers<[1], [0], [0], [1], [0, 0, 1, 1], [], []>} : vector<32x32xf32>, vector<32x128xf32>, vector<32x128xf32> -> vector<32x128xf32>
    %183 = vector.extract_strided_slice %182 {offsets = [0, 0], sizes = [8, 128], strides = [1, 1]} : vector<32x128xf32> to vector<8x128xf32>
    %184 = vector.extract_strided_slice %182 {offsets = [8, 0], sizes = [8, 128], strides = [1, 1]} : vector<32x128xf32> to vector<8x128xf32>
    %185 = vector.extract_strided_slice %182 {offsets = [16, 0], sizes = [8, 128], strides = [1, 1]} : vector<32x128xf32> to vector<8x128xf32>
    %186 = vector.extract_strided_slice %182 {offsets = [24, 0], sizes = [8, 128], strides = [1, 1]} : vector<32x128xf32> to vector<8x128xf32>
    %187 = arith.maximumf %183, %184 : vector<8x128xf32>
    %188 = arith.maximumf %185, %186 : vector<8x128xf32>
    %189 = arith.maximumf %187, %188 : vector<8x128xf32>
    %c0_34 = arith.constant 0 : index
    %c0_35 = arith.constant 0 : index
    %190 = vector.load %arg9[%c0_34, %c0_35] : memref<8x128xf32, #tpu.memory_space<vmem>>, vector<8x128xf32>
    tpu.vector_store %arg9[%c0_34, %c0_35], %189 {strides = array<i32>} : memref<8x128xf32, #tpu.memory_space<vmem>>, vector<8x128xf32>,
    return
  }
}

</mosaic_0001>

<bundles_post_ra>
// kernel: block_first_forward.1
= control target key start
LH: loop header
LB: loop body
LE: loop exit
PB: predicated region body
PF: predicated region fallthrough
CT: control target
= control target key end

     0   :  { %s3266_s0 = inlined_call_operand.vmem [shape: bf16[128,128], index: 0, kind: input, shape index: {}]   ;;  %s3267_s1 = inlined_call_operand.vmem [shape: bf16[128,128], index: 1, kind: input, shape index: {}]   ;;  %s3268_s2 = inlined_call_operand.vmem [shape: f32[1,128], index: 2, kind: input, shape index: {}]   ;;  %s3269_s3 = inlined_call_operand.vmem [shape: f32[1,128], index: 3, kind: input, shape index: {}]   ;;  %s3270_s4 = inlined_call_operand.vmem [shape: bf16[800,128], index: 4, kind: input, shape index: {}]   ;;  %s3271_s5 = inlined_call_operand.vmem [shape: bf16[256,128], index: 5, kind: input, shape index: {}]   ;;  %s3272_s6 = inlined_call_operand.vmem [shape: f32[1,128], index: 6, kind: input, shape index: {}]   ;;  %s3273_s7 = inlined_call_operand.vmem [shape: f32[1,128], index: 7, kind: input, shape index: {}]   ;;  %s3274_s8 = inlined_call_operand.vmem [shape: f32[32,32], index: 8, kind: input, shape index: {}]   ;;  %s3275_s9 = inlined_call_operand.hbm [shape: f32[8,128], index: 9, kind: output, shape index: {}]  }
   0x1   :  { %v2447_v0 = vld [vmem:[%s3267_s1] sm:$0xff]   ;;  %v2448_v1 = vld [vmem:[%s3267_s1 + $0x8] sm:$0xff]   ;;  %v2449_v2 = vld [vmem:[%s3267_s1 + $0x10] sm:$0xff]  }
   0x2   :  { %2245 = vmatprep.subr.bf16.mxu0 %v2447_v0  ;;  %v2450_v3 = vld [vmem:[%s3267_s1 + $0x18] sm:$0xff]   ;;  %v2455_v4 = vld [vmem:[%s3266_s0] sm:$0xff]   ;;  %v2452_v6 = vld [vmem:[%s3267_s1 + $0x28] sm:$0xff]  }
   0x3   :  { %2246 = vmatpush3.bf16.msra.mxu0 %v2447_v0  ;;  %2261 = vmatprep.mubr.bf16.mxu0 %v2455_v4  ;;  %v2451_v5 = vld [vmem:[%s3267_s1 + $0x20] sm:$0xff]   ;;  %v2453_v7 = vld [vmem:[%s3267_s1 + $0x30] sm:$0xff]   ;;  %v2454_v8 = vld [vmem:[%s3267_s1 + $0x38] sm:$0xff]  }
   0x4   :  { %2247 = vmatprep.subr.bf16.mxu0 %v2448_v1  ;;  %v2456_v9 = vld [vmem:[%s3266_s0 + $0x8] sm:$0xff]   ;;  %v2457_v10 = vld [vmem:[%s3266_s0 + $0x10] sm:$0xff]   ;;  %v2458_v11 = vld [vmem:[%s3266_s0 + $0x18] sm:$0xff]  }
   0x5   :  { %v2459_v12 = vld [vmem:[%s3266_s0 + $0x20] sm:$0xff]   ;;  %v2460_v13 = vld [vmem:[%s3266_s0 + $0x28] sm:$0xff]   ;;  %v2461_v14 = vld [vmem:[%s3266_s0 + $0x30] sm:$0xff]  }
   0x6   :  { %v2462_v15 = vld [vmem:[%s3266_s0 + $0x38] sm:$0xff]  }
   0x7   :  { %2248 = vmatpush3.bf16.msra.mxu0 %v2448_v1 }
   0x8   :  { %2249 = vmatprep.subr.bf16.mxu0 %v2449_v2 }
   0xb   :  { %2250 = vmatpush3.bf16.msra.mxu0 %v2449_v2 }
   0xc   :  { %2251 = vmatprep.subr.bf16.mxu0 %v2450_v3 }
   0xf   :  { %2252 = vmatpush3.bf16.msra.mxu0 %v2450_v3 }
  0x10   :  { %2253 = vmatprep.subr.bf16.mxu0 %v2451_v5 }
  0x13   :  { %2254 = vmatpush3.bf16.msra.mxu0 %v2451_v5 }
  0x14   :  { %2255 = vmatprep.subr.bf16.mxu0 %v2452_v6 }
  0x17   :  { %2256 = vmatpush3.bf16.msra.mxu0 %v2452_v6 }
  0x18   :  { %2257 = vmatprep.subr.bf16.mxu0 %v2453_v7 }
  0x1b   :  { %2258 = vmatpush3.bf16.msra.mxu0 %v2453_v7 }
  0x1c   :  { %2259 = vmatprep.subr.bf16.mxu0 %v2454_v8 }
  0x1f   :  { %2260 = vmatpush3.bf16.msra.mxu0 %v2454_v8 }
  0x22   :  { %2262 = vmatmul.mubr.bf16.vlgmr.msra.gmra.mrb[0].mxu0 %v2456_v9 }
  0x23   :  { %2265 = vmatprep.mubr.bf16.mxu0 %v2457_v10 }
  0x2a   :  { %2266 = vmatmul.mubr.bf16.gmra.mrb[4].mxu0 %v2458_v11 }
  0x2b   :  { %2269 = vmatprep.mubr.bf16.mxu0 %v2459_v12 }
  0x32   :  { %2270 = vmatmul.mubr.bf16.gmra.mrb[8].mxu0 %v2460_v13 }
  0x33   :  { %2273 = vmatprep.mubr.bf16.mxu0 %v2461_v14 }
  0x3a   :  { %2274 = vmatmul.mubr.bf16.gmra.mrb[12].mxu0 %v2462_v15 }
  0x3b   :  { %14 = vsyncpa [#allocation3], 0  ;;  %v2463_v16 = vld [vmem:[%s3270_s4] sm:$0xff]   ;;  %v2464_v17 = vld [vmem:[%s3270_s4 + $0x90] sm:$0xff]   ;;  %s2557_s0 = smov 72   ;;  %s2559_s23 = smov 80  }
  0x3c   :  { %2293 = vmatprep.mubr.bf16.mxu0 %v2463_v16  ;;  %2329 = vmatprep.mubr.bf16.mxu1 %v2464_v17  ;;  %s2560_s24 = smov 16   ;;  %s2561_s25 = smov 88   ;;  %vm1306_vm0 = vcmask 261120  }
  0x3d   :  { %s2564_s26 = smov 32   ;;  %s2565_s27 = smov 104  }
  0x3e   :  { %s2566_s28 = smov 40   ;;  %s2567_s29 = smov 112  }
  0x3f   :  { %s2568_s30 = smov 48   ;;  %s2569_s10 = smov 120  }
  0x40   :  { %s2570_s11 = smov 56   ;;  %s2571_s15 = smov 64  }
  0xf5   :  { %v2677_v18 = vpop.f32.mrb[0].mxu0 }
  0xf6   :  { %v2679_v19 = vpop.f32.mrb[1].mxu0  ;;  %v284_v25 = vmul.f32 %v2677_v18, %v2677_v18 }
  0xf7   :  { %v2681_v20 = vpop.f32.mrb[2].mxu0  ;;  %v282_v22 = vmul.f32 %v2679_v19, %v2679_v19 }
  0xf8   :  { %v2683_v21 = vpop.f32.mrb[3].mxu0  ;;  %v285_v28 = vmul.f32 %v2681_v20, %v2681_v20 }
  0xf9   :  { %v261_v23 = vadd.f32 %v2683_v21, %v2679_v19  ;;  %v283_v24 = vmul.f32 %v2683_v21, %v2683_v21 }
  0xfb   :  { %v262_v26 = vadd.f32 %v2677_v18, %v261_v23  ;;  %v298_v27 = vadd.f32 %v283_v24, %v282_v22 }
  0xfd   :  { %v299_v29 = vadd.f32 %v298_v27, %v284_v25  ;;  %v2696_v30 = vpop.f32.mrb[4].mxu0  ;;  %v263_v31 = vadd.f32 %v2681_v20, %v262_v26 }
  0xfe   :  { %v2699_v32 = vpop.f32.mrb[5].mxu0  ;;  %v288_v41 = vmul.f32 %v2696_v30, %v2696_v30 }
  0xff   :  { %v264_v33 = vadd.f32 %v263_v31, %v2699_v32  ;;  %v286_v34 = vmul.f32 %v2699_v32, %v2699_v32  ;;  %v300_v35 = vadd.f32 %v299_v29, %v285_v28  ;;  %v2704_v36 = vpop.f32.mrb[6].mxu0 }
 0x100   :  { %v2706_v37 = vpop.f32.mrb[7].mxu0  ;;  %v289_v44 = vmul.f32 %v2704_v36, %v2704_v36 }
 0x101   :  { %v301_v38 = vadd.f32 %v300_v35, %v286_v34  ;;  %v265_v39 = vadd.f32 %v264_v33, %v2706_v37  ;;  %v287_v40 = vmul.f32 %v2706_v37, %v2706_v37 }
 0x103   :  { %v266_v42 = vadd.f32 %v2696_v30, %v265_v39  ;;  %v302_v43 = vadd.f32 %v301_v38, %v287_v40 }
 0x105   :  { %v303_v45 = vadd.f32 %v302_v43, %v288_v41  ;;  %v2716_v46 = vpop.f32.mrb[8].mxu0  ;;  %v267_v47 = vadd.f32 %v2704_v36, %v266_v42  ;;  %v330_v42 = vlaneseq }
 0x106   :  { %v2719_v48 = vpop.f32.mrb[9].mxu0  ;;  %v292_v57 = vmul.f32 %v2716_v46, %v2716_v46 }
 0x107   :  { %v268_v49 = vadd.f32 %v267_v47, %v2719_v48  ;;  %v290_v50 = vmul.f32 %v2719_v48, %v2719_v48  ;;  %v304_v51 = vadd.f32 %v303_v45, %v289_v44  ;;  %v2724_v52 = vpop.f32.mrb[10].mxu0  ;;  %v331_v43 = vshrl.u32 %v330_v42, 7  ;;  %v259_v44 = vld [vmem:[%s3268_s2] sm:$0x1]  ;;  %s2562_s2 = smov 24  }
 0x108   :  { %v2726_v53 = vpop.f32.mrb[11].mxu0  ;;  %v293_v60 = vmul.f32 %v2724_v52, %v2724_v52 }
 0x109   :  { %v305_v54 = vadd.f32 %v304_v51, %v290_v50  ;;  %v269_v55 = vadd.f32 %v268_v49, %v2726_v53  ;;  %v291_v56 = vmul.f32 %v2726_v53, %v2726_v53  ;;  %v2750_v45 = vsub.s32 0, %v331_v43  ;;  %v260_v50 = vld [vmem:[%s3269_s3] sm:$0x1]  ;;  %s2563_s3 = smov 96  }
 0x10b   :  { %v270_v58 = vadd.f32 %v2716_v46, %v269_v55  ;;  %v306_v59 = vadd.f32 %v305_v54, %v291_v56 }
 0x10d   :  { %v307_v61 = vadd.f32 %v306_v59, %v292_v57  ;;  %v2736_v62 = vpop.f32.mrb[12].mxu0  ;;  %v271_v63 = vadd.f32 %v2724_v52, %v270_v58 }
 0x10e   :  { %v244_v0 = vpop.f32.mrb[13].mxu0  ;;  %v296_v9 = vmul.f32 %v2736_v62, %v2736_v62 }
 0x10f   :  { %v272_v1 = vadd.f32 %v271_v63, %v244_v0  ;;  %v294_v2 = vmul.f32 %v244_v0, %v244_v0  ;;  %v308_v3 = vadd.f32 %v307_v61, %v293_v60  ;;  %v2739_v4 = vpop.f32.mrb[14].mxu0 }
 0x110   :  { %v247_v5 = vpop.f32.mrb[15].mxu0  ;;  %v297_v12 = vmul.f32 %v2739_v4, %v2739_v4 }
 0x111   :  { %v309_v6 = vadd.f32 %v308_v3, %v294_v2  ;;  %v273_v7 = vadd.f32 %v272_v1, %v247_v5  ;;  %v295_v8 = vmul.f32 %v247_v5, %v247_v5 }
 0x113   :  { %v274_v10 = vadd.f32 %v2736_v62, %v273_v7  ;;  %v310_v11 = vadd.f32 %v309_v6, %v295_v8 }
 0x115   :  { %v275_v13 = vadd.f32 %v2739_v4, %v274_v10  ;;  %v311_v14 = vadd.f32 %v310_v11, %v296_v9 }
 0x117   :  { %v276_v15 = vrot.slane %v275_v13, 4  ;;  %v312_v16 = vadd.f32 %v311_v14, %v297_v12 }
 0x119   :  { %v277_v17 = vadd.f32 %v276_v15, %v275_v13  ;;  %v313_v22 = vrot.slane %v312_v16, 4 }
 0x11b   :  { %v278_v23 = vrot.slane %v277_v17, 2  ;;  %v314_v24 = vadd.f32 %v313_v22, %v312_v16 }
 0x11d   :  { %v279_v25 = vadd.f32 %v278_v23, %v277_v17  ;;  %v315_v26 = vrot.slane %v314_v24, 2 }
 0x11f   :  { %v280_v27 = vrot.slane %v279_v25, 1  ;;  %v316_v28 = vadd.f32 %v315_v26, %v314_v24 }
 0x121   :  { %v281_v29 = vadd.f32 %v280_v27, %v279_v25  ;;  %v317_v31 = vrot.slane %v316_v28, 1 }
 0x123   :  { %v318_v33 = vadd.f32 %v317_v31, %v316_v28  ;;  %v319_v34 = vmul.f32 0.0078125, %v281_v29 }
 0x125   :  { %v320_v35 = vmul.f32 0.0078125, %v318_v33  ;;  %v321_v38 = vmul.f32 %v319_v34, %v319_v34 }
 0x127   :  { %v322_v39 = vsub.f32 %v320_v35, %v321_v38 }
 0x129   :  { %v323_v40 = vmax.f32 %v322_v39, 0.0 }
 0x12b   :  { %v324_v41 = vadd.f32 1e-05, %v323_v40 }
 0x12d   :  { %2529 = vrsqrt.f32 %v324_v41 }
 0x137   :  { %v2530_v47 = vpop.eup %2529 }
 0x138   :  { %v326_v49 = vmul.f32 %v2530_v47, %v259_v44 }
 0x13a   :  { %v327_v51 = vmul.f32 %v326_v49, %v319_v34  ;;  %v333_v54 = vrot.slane %v326_v49, %v2750_v45 }
 0x13c   :  { %v328_v55 = vsub.f32 %v260_v50, %v327_v51  ;;  %v348_v56 = vmul.f32 %v333_v54, %v247_v5  ;;  %v335_v57 = vmul.f32 %v333_v54, %v2679_v19  ;;  %v336_v58 = vmul.f32 %v333_v54, %v2683_v21  ;;  %v2467_v50 = vld [vmem:[%s3270_s4 + $0x10] sm:$0xff]   ;;  %v2469_v51 = vld [vmem:[%s3270_s4 + $0xa0] sm:$0xff]  }
 0x13d   :  { %v337_v59 = vmul.f32 %v2677_v18, %v333_v54  ;;  %v338_v60 = vmul.f32 %v2681_v20, %v333_v54  ;;  %v339_v61 = vmul.f32 %v333_v54, %v2699_v32  ;;  %v340_v63 = vmul.f32 %v333_v54, %v2706_v37 }
 0x13e   :  { %v355_v1 = vrot.slane %v328_v55, %v2750_v45  ;;  %v341_v2 = vmul.f32 %v2696_v30, %v333_v54  ;;  %v342_v3 = vmul.f32 %v2704_v36, %v333_v54  ;;  %v343_v5 = vmul.f32 %v333_v54, %v2719_v48  ;;  %v2470_v55 = vld [vmem:[%s3270_s4 + $0xa8] sm:$0xff]  }
 0x13f   :  { %v344_v19 = vmul.f32 %v333_v54, %v2726_v53  ;;  %v345_v21 = vmul.f32 %v2716_v46, %v333_v54  ;;  %v346_v18 = vmul.f32 %v2724_v52, %v333_v54  ;;  %v347_v6 = vmul.f32 %v333_v54, %v244_v0 }
 0x140   :  { %v370_v20 = vadd.f32 %v355_v1, %v348_v56  ;;  %v357_v7 = vadd.f32 %v355_v1, %v335_v57  ;;  %v358_v32 = vadd.f32 %v355_v1, %v336_v58  ;;  %v359_v8 = vadd.f32 %v355_v1, %v337_v59  ;;  %v2471_v56 = vld [vmem:[%s3270_s4 + $0x20] sm:$0xff]   ;;  %v2473_v57 = vld [vmem:[%s3270_s4 + $0xb0] sm:$0xff]   ;;  %v2472_v58 = vld [vmem:[%s3270_s4 + $0x28] sm:$0xff]  }
 0x141   :  { %v360_v37 = vadd.f32 %v355_v1, %v338_v60  ;;  %v361_v9 = vadd.f32 %v355_v1, %v339_v61  ;;  %v362_v10 = vadd.f32 %v355_v1, %v340_v63  ;;  %v363_v11 = vadd.f32 %v355_v1, %v341_v2  ;;  %v2474_v59 = vld [vmem:[%s3270_s4 + $0xb8] sm:$0xff]   ;;  %v2475_v60 = vld [vmem:[%s3270_s4 + $0x30] sm:$0xff]   ;;  %v2477_v61 = vld [vmem:[%s3270_s4 + $0xc0] sm:$0xff]  }
 0x142   :  { %v386_v30 = vmax.f32 %v370_v20, 0.0  ;;  %v373_v12 = vmax.f32 %v357_v7, 0.0  ;;  %v374_v36 = vmax.f32 %v358_v32, 0.0  ;;  %v375_v13 = vmax.f32 %v359_v8, 0.0  ;;  %v2476_v63 = vld [vmem:[%s3270_s4 + $0x38] sm:$0xff]   ;;  %v2479_v2 = vld [vmem:[%s3270_s4 + $0x40] sm:$0xff]  }
 0x143   :  { %v376_v48 = vmax.f32 %v360_v37, 0.0  ;;  %v377_v14 = vmax.f32 %v361_v9, 0.0  ;;  %v378_v53 = vmax.f32 %v362_v10, 0.0  ;;  %v364_v15 = vadd.f32 %v355_v1, %v342_v3  ;;  %v2481_v3 = vld [vmem:[%s3270_s4 + $0xd0] sm:$0xff]   ;;  %v2486_v20 = vld [vmem:[%s3270_s4 + $0xe8] sm:$0xff]   ;;  %v2487_v7 = vld [vmem:[%s3270_s4 + $0x60] sm:$0xff]  }
 0x144   :  { %v489_v46 = vpack.c.bf16 %v374_v36, %v373_v12  ;;  %v379_v16 = vmax.f32 %v363_v11, 0.0  ;;  %v365_v52 = vadd.f32 %v355_v1, %v343_v5  ;;  %v366_v0 = vadd.f32 %v355_v1, %v344_v19  ;;  %v2480_v5 = vld [vmem:[%s3270_s4 + $0x48] sm:$0xff]   ;;  %v2482_v19 = vld [vmem:[%s3270_s4 + $0xd8] sm:$0xff]   ;;  %v2489_v32 = vld [vmem:[%s3270_s4 + $0xf0] sm:$0xff]  }
 0x145   :  { %v490_v17 = vpack.c.bf16 %v376_v48, %v375_v13  ;;  %v491_v22 = vpack.c.bf16 %v378_v53, %v377_v14  ;;  %v380_v23 = vmax.f32 %v364_v15, 0.0  ;;  %v367_v24 = vadd.f32 %v355_v1, %v345_v21  ;;  %v2483_v21 = vld [vmem:[%s3270_s4 + $0x50] sm:$0xff]   ;;  %v2488_v8 = vld [vmem:[%s3270_s4 + $0x68] sm:$0xff]   ;;  %v2490_v37 = vld [vmem:[%s3270_s4 + $0xf8] sm:$0xff]  }
 0x146   :  { %2277 = vmatprep.subr.bf16.mxu0 %v489_v46  ;;  %2415 = vmatprep.subr.bf16.mxu1 %v489_v46  ;;  %v381_v25 = vmax.f32 %v365_v52, 0.0  ;;  %v382_v26 = vmax.f32 %v366_v0, 0.0  ;;  %v368_v27 = vadd.f32 %v355_v1, %v346_v18  ;;  %v369_v28 = vadd.f32 %v355_v1, %v347_v6  ;;  %v2485_v18 = vld [vmem:[%s3270_s4 + $0xe0] sm:$0xff]   ;;  %v2484_v6 = vld [vmem:[%s3270_s4 + $0x58] sm:$0xff]   ;;  %v2491_v9 = vld [vmem:[%s3270_s4 + $0x70] sm:$0xff]  }
 0x147   :  { %2278 = vmatpush3.bf16.msra.mxu0 %v489_v46  ;;  %2423 = vmatpush3.bf16.msra.mxu1 %v489_v46  ;;  %v492_v29 = vpack.c.bf16 %v380_v23, %v379_v16  ;;  %v383_v31 = vmax.f32 %v367_v24, 0.0  ;;  %v349_v33 = vmul.f32 %v2736_v62, %v333_v54  ;;  %v350_v34 = vmul.f32 %v2739_v4, %v333_v54  ;;  %v2465_v62 = vld [vmem:[%s3270_s4 + $0x8] sm:$0xff]   ;;  %v2466_v4 = vld [vmem:[%s3270_s4 + $0x98] sm:$0xff]   ;;  %v2492_v10 = vld [vmem:[%s3270_s4 + $0x100] sm:$0xff]  }
 0x148   :  { %2279 = vmatprep.subr.bf16.mxu0 %v490_v17  ;;  %2416 = vmatprep.subr.bf16.mxu1 %v490_v17  ;;  %v493_v35 = vpack.c.bf16 %v382_v26, %v381_v25  ;;  %v384_v38 = vmax.f32 %v368_v27, 0.0  ;;  %v385_v39 = vmax.f32 %v369_v28, 0.0  ;;  %v2468_v54 = vld [vmem:[%s3270_s4 + $0x18] sm:$0xff]   ;;  %v2495_v12 = vld [vmem:[%s3270_s4 + $0x110] sm:$0xff]   ;;  %v2497_v36 = vld [vmem:[%s3270_s4 + $0x80] sm:$0xff]  }
 0x149   :  { %v371_v40 = vadd.f32 %v355_v1, %v349_v33  ;;  %v372_v41 = vadd.f32 %v355_v1, %v350_v34  ;;  %v2478_v1 = vld [vmem:[%s3270_s4 + $0xc8] sm:$0xff]   ;;  %v2493_v11 = vld [vmem:[%s3270_s4 + $0x78] sm:$0xff]   ;;  %v2499_v14 = vld [vmem:[%s3270_s4 + $0x120] sm:$0xff]  }
 0x14a   :  { %v494_v42 = vpack.c.bf16 %v384_v38, %v383_v31  ;;  %v495_v43 = vpack.c.bf16 %v386_v30, %v385_v39  ;;  %v2494_v30 = vld [vmem:[%s3270_s4 + $0x108] sm:$0xff]   ;;  %v2496_v13 = vld [vmem:[%s3270_s4 + $0x118] sm:$0xff]   ;;  %v2501_v15 = vld [vmem:[%s3270_s4 + $0x130] sm:$0xff]  }
 0x14b   :  { %2280 = vmatpush3.bf16.msra.mxu0 %v490_v17  ;;  %2424 = vmatpush3.bf16.msra.mxu1 %v490_v17  ;;  %v387_v44 = vmax.f32 %v371_v40, 0.0  ;;  %v388_v47 = vmax.f32 %v372_v41, 0.0  ;;  %v2498_v48 = vld [vmem:[%s3270_s4 + $0x88] sm:$0xff]   ;;  %v2502_v46 = vld [vmem:[%s3270_s4 + $0x138] sm:$0xff]   ;;  %v2503_v16 = vld [vmem:[%s3270_s4 + $0x140] sm:$0xff]  }
 0x14c   :  { %2281 = vmatprep.subr.bf16.mxu0 %v491_v22  ;;  %2417 = vmatprep.subr.bf16.mxu1 %v491_v22  ;;  %v2500_v53 = vld [vmem:[%s3270_s4 + $0x128] sm:$0xff]   ;;  %v2505_v0 = vld [vmem:[%s3270_s4 + $0x150] sm:$0xff]   ;;  %v2506_v17 = vld [vmem:[%s3270_s4 + $0x158] sm:$0xff]  }
 0x14d   :  { %v496_v49 = vpack.c.bf16 %v388_v47, %v387_v44  ;;  %v2504_v52 = vld [vmem:[%s3270_s4 + $0x148] sm:$0xff]   ;;  %v2509_v24 = vld [vmem:[%s3270_s4 + $0x170] sm:$0xff]   ;;  %v2510_v25 = vld [vmem:[%s3270_s4 + $0x178] sm:$0xff]  }
 0x14e   :  { %v2508_v23 = vld [vmem:[%s3270_s4 + $0x168] sm:$0xff]   ;;  %v2511_v26 = vld [vmem:[%s3270_s4 + $0x180] sm:$0xff]  }
 0x14f   :  { %2282 = vmatpush3.bf16.msra.mxu0 %v491_v22  ;;  %2425 = vmatpush3.bf16.msra.mxu1 %v491_v22  ;;  %v2507_v22 = vld [vmem:[%s3270_s4 + $0x160] sm:$0xff]   ;;  %v2512_v27 = vld [vmem:[%s3270_s4 + $0x188] sm:$0xff]   ;;  %s2558_s4 = smov 8  }
 0x150   :  { %2283 = vmatprep.subr.bf16.mxu0 %v492_v29  ;;  %2418 = vmatprep.subr.bf16.mxu1 %v492_v29 }
 0x153   :  { %2284 = vmatpush3.bf16.msra.mxu0 %v492_v29  ;;  %2426 = vmatpush3.bf16.msra.mxu1 %v492_v29 }
 0x154   :  { %2285 = vmatprep.subr.bf16.mxu0 %v493_v35  ;;  %2419 = vmatprep.subr.bf16.mxu1 %v493_v35 }
 0x157   :  { %2286 = vmatpush3.bf16.msra.mxu0 %v493_v35  ;;  %2427 = vmatpush3.bf16.msra.mxu1 %v493_v35 }
 0x158   :  { %2287 = vmatprep.subr.bf16.mxu0 %v494_v42  ;;  %2420 = vmatprep.subr.bf16.mxu1 %v494_v42 }
 0x15b   :  { %2288 = vmatpush3.bf16.msra.mxu0 %v494_v42  ;;  %2428 = vmatpush3.bf16.msra.mxu1 %v494_v42 }
 0x15c   :  { %2289 = vmatprep.subr.bf16.mxu0 %v495_v43  ;;  %2421 = vmatprep.subr.bf16.mxu1 %v495_v43 }
 0x15f   :  { %2290 = vmatpush3.bf16.msra.mxu0 %v495_v43  ;;  %2429 = vmatpush3.bf16.msra.mxu1 %v495_v43 }
 0x160   :  { %2291 = vmatprep.subr.bf16.mxu0 %v496_v49  ;;  %2422 = vmatprep.subr.bf16.mxu1 %v496_v49 }
 0x163   :  { %2292 = vmatpush3.bf16.msra.mxu0 %v496_v49  ;;  %2430 = vmatpush3.bf16.msra.mxu1 %v496_v49 }
 0x166   :  { %2294 = vmatmul.mubr.bf16.vlgmr.msra.gmra.mrb[16].mxu0 %v2465_v62  ;;  %2330 = vmatmul.mubr.bf16.vlgmr.msra.gmra.mrb[0].mxu1 %v2466_v4 }
 0x167   :  { %2297 = vmatprep.mubr.bf16.mxu0 %v2467_v50  ;;  %2333 = vmatprep.mubr.bf16.mxu1 %v2469_v51 }
 0x16e   :  { %2298 = vmatmul.mubr.bf16.gmra.mrb[20].mxu0 %v2468_v54  ;;  %2334 = vmatmul.mubr.bf16.gmra.mrb[4].mxu1 %v2470_v55 }
 0x16f   :  { %2301 = vmatprep.mubr.bf16.mxu0 %v2471_v56  ;;  %2337 = vmatprep.mubr.bf16.mxu1 %v2473_v57 }
 0x176   :  { %2302 = vmatmul.mubr.bf16.gmra.mrb[24].mxu0 %v2472_v58  ;;  %2338 = vmatmul.mubr.bf16.gmra.mrb[8].mxu1 %v2474_v59 }
 0x177   :  { %2305 = vmatprep.mubr.bf16.mxu0 %v2475_v60  ;;  %2341 = vmatprep.mubr.bf16.mxu1 %v2477_v61 }
 0x17e   :  { %2306 = vmatmul.mubr.bf16.gmra.mrb[28].mxu0 %v2476_v63  ;;  %2342 = vmatmul.mubr.bf16.gmra.mrb[12].mxu1 %v2478_v1 }
 0x17f   :  { %2309 = vmatprep.mubr.bf16.mxu0 %v2479_v2  ;;  %2345 = vmatprep.mubr.bf16.mxu1 %v2481_v3 }
 0x186   :  { %2310 = vmatmul.mubr.bf16.gmra.mrb[32].mxu0 %v2480_v5  ;;  %2346 = vmatmul.mubr.bf16.gmra.mrb[16].mxu1 %v2482_v19 }
 0x187   :  { %2313 = vmatprep.mubr.bf16.mxu0 %v2483_v21  ;;  %2349 = vmatprep.mubr.bf16.mxu1 %v2485_v18 }
 0x18e   :  { %2314 = vmatmul.mubr.bf16.gmra.mrb[36].mxu0 %v2484_v6  ;;  %2350 = vmatmul.mubr.bf16.gmra.mrb[20].mxu1 %v2486_v20 }
 0x18f   :  { %2317 = vmatprep.mubr.bf16.mxu0 %v2487_v7  ;;  %2353 = vmatprep.mubr.bf16.mxu1 %v2489_v32 }
 0x196   :  { %2318 = vmatmul.mubr.bf16.gmra.mrb[40].mxu0 %v2488_v8  ;;  %2354 = vmatmul.mubr.bf16.gmra.mrb[24].mxu1 %v2490_v37 }
 0x197   :  { %2321 = vmatprep.mubr.bf16.mxu0 %v2491_v9  ;;  %2357 = vmatprep.mubr.bf16.mxu1 %v2492_v10 }
 0x19e   :  { %2322 = vmatmul.mubr.bf16.gmra.mrb[44].mxu0 %v2493_v11  ;;  %2358 = vmatmul.mubr.bf16.gmra.mrb[28].mxu1 %v2494_v30 }
 0x19f   :  { %2361 = vmatprep.mubr.bf16.mxu1 %v2495_v12  ;;  %2325 = vmatprep.mubr.bf16.mxu0 %v2497_v36 }
 0x1a6   :  { %2362 = vmatmul.mubr.bf16.gmra.mrb[32].mxu1 %v2496_v13  ;;  %2326 = vmatmul.mubr.bf16.gmra.mrb[48].mxu0 %v2498_v48 }
 0x1a7   :  { %2365 = vmatprep.mubr.bf16.mxu1 %v2499_v14 }
 0x1ae   :  { %2366 = vmatmul.mubr.bf16.gmra.mrb[36].mxu1 %v2500_v53 }
 0x1af   :  { %2369 = vmatprep.mubr.bf16.mxu1 %v2501_v15 }
 0x1b6   :  { %2370 = vmatmul.mubr.bf16.gmra.mrb[40].mxu1 %v2502_v46 }
 0x1b7   :  { %2373 = vmatprep.mubr.bf16.mxu1 %v2503_v16 }
 0x1be   :  { %2374 = vmatmul.mubr.bf16.gmra.mrb[44].mxu1 %v2504_v52 }
 0x1bf   :  { %2377 = vmatprep.mubr.bf16.mxu1 %v2505_v0 }
 0x1c6   :  { %2378 = vmatmul.mubr.bf16.gmra.mrb[48].mxu1 %v2506_v17 }
 0x1c7   :  { %2381 = vmatprep.mubr.bf16.mxu1 %v2507_v22 }
 0x1ce   :  { %2382 = vmatmul.mubr.bf16.gmra.mrb[52].mxu1 %v2508_v23 }
 0x1cf   :  { %2385 = vmatprep.mubr.bf16.mxu1 %v2509_v24 }
 0x1d6   :  { %2386 = vmatmul.mubr.bf16.gmra.mrb[56].mxu1 %v2510_v25 }
 0x1d7   :  { %2389 = vmatprep.mubr.bf16.mxu1 %v2511_v26 }
 0x1de   :  { %2390 = vmatmul.mubr.bf16.gmra.mrb[60].mxu1 %v2512_v27 }
 0x239   :  { %v2915_v28 = vpop.f32.mrb[16].mxu0  ;;  %v2331_v29 = vpop.f32.mrb[0].mxu1 }
 0x23a   :  { %1399 = vrot.lane.b32.xlu0 %v2331_v29, %s2557_s0  ;;  %v2917_v31 = vpop.f32.mrb[17].mxu0  ;;  %v975_v33 = vpop.f32.mrb[1].mxu1 }
 0x23b   :  { %v2919_v34 = vpop.f32.mrb[18].mxu0  ;;  %v2332_v35 = vpop.f32.mrb[2].mxu1 }
 0x23c   :  { %1401 = vrot.lane.b32.xlu1 %v2332_v35, %s2557_s0  ;;  %v2921_v38 = vpop.f32.mrb[19].mxu0  ;;  %v978_v39 = vpop.f32.mrb[3].mxu1 }
 0x23e   :  { %1395 = vrot.lane.b32.xlu0 %v975_v33, %s2557_s0 }
 0x240   :  { %1397 = vrot.lane.b32.xlu1 %v978_v39, %s2557_s0 }
 0x241   :  { %v2299_v40 = vpop.f32.mrb[20].mxu0  ;;  %v2335_v41 = vpop.f32.mrb[4].mxu1 }
 0x242   :  { %1238 = vrot.lane.b32.xlu0 %v2299_v40, %s2558_s4  ;;  %v847_v42 = vpop.f32.mrb[21].mxu0  ;;  %v991_v43 = vpop.f32.mrb[5].mxu1 }
 0x243   :  { %v2300_v44 = vpop.f32.mrb[22].mxu0  ;;  %v2336_v47 = vpop.f32.mrb[6].mxu1 }
 0x244   :  { %1240 = vrot.lane.b32.xlu1 %v2300_v44, %s2558_s4  ;;  %v850_v49 = vpop.f32.mrb[23].mxu0  ;;  %v994_v62 = vpop.f32.mrb[7].mxu1 }
 0x246   :  { %1419 = vrot.lane.b32.xlu0 %v2335_v41, %s2559_s23 }
 0x248   :  { %1421 = vrot.lane.b32.xlu1 %v2336_v47, %s2559_s23 }
 0x249   :  { %v2303_v4 = vpop.f32.mrb[24].mxu0  ;;  %v2339_v50 = vpop.f32.mrb[8].mxu1 }
 0x24a   :  { %1234 = vrot.lane.b32.xlu0 %v847_v42, %s2558_s4  ;;  %v863_v51 = vpop.f32.mrb[25].mxu0  ;;  %v1007_v54 = vpop.f32.mrb[9].mxu1 }
 0x24b   :  { %v2304_v55 = vpop.f32.mrb[26].mxu0  ;;  %v2340_v56 = vpop.f32.mrb[10].mxu1 }
 0x24c   :  { %1417 = vrot.lane.b32.xlu1 %v994_v62, %s2559_s23  ;;  %v866_v57 = vpop.f32.mrb[27].mxu0  ;;  %v1010_v58 = vpop.f32.mrb[11].mxu1 }
 0x24e   :  { %1415 = vrot.lane.b32.xlu0 %v991_v43, %s2559_s23 }
 0x250   :  { %1254 = vrot.lane.b32.xlu1 %v863_v51, %s2560_s24 }
 0x251   :  { %v2307_v59 = vpop.f32.mrb[28].mxu0  ;;  %v2343_v60 = vpop.f32.mrb[12].mxu1 }
 0x252   :  { %1236 = vrot.lane.b32.xlu0 %v850_v49, %s2558_s4  ;;  %v879_v61 = vpop.f32.mrb[29].mxu0  ;;  %v1023_v63 = vpop.f32.mrb[13].mxu1 }
 0x253   :  { %v2308_v1 = vpop.f32.mrb[30].mxu0  ;;  %v2344_v2 = vpop.f32.mrb[14].mxu1 }
 0x254   :  { %1260 = vrot.lane.b32.xlu1 %v2304_v55, %s2560_s24  ;;  %v882_v3 = vpop.f32.mrb[31].mxu0  ;;  %v1026_v5 = vpop.f32.mrb[15].mxu1 }
 0x256   :  { %1258 = vrot.lane.b32.xlu0 %v2303_v4, %s2560_s24 }
 0x258   :  { %1441 = vrot.lane.b32.xlu1 %v2340_v56, %s2561_s25 }
 0x259   :  { %v2311_v19 = vpop.f32.mrb[32].mxu0  ;;  %v2347_v21 = vpop.f32.mrb[16].mxu1 }
 0x25a   :  { %1439 = vrot.lane.b32.xlu0 %v2339_v50, %s2561_s25  ;;  %v895_v18 = vpop.f32.mrb[33].mxu0  ;;  %v1039_v6 = vpop.f32.mrb[17].mxu1 }
 0x25b   :  { %v2312_v20 = vpop.f32.mrb[34].mxu0  ;;  %v2348_v7 = vpop.f32.mrb[18].mxu1 }
 0x25c   :  { %1256 = vrot.lane.b32.xlu1 %v866_v57, %s2560_s24  ;;  %v898_v32 = vpop.f32.mrb[35].mxu0  ;;  %v1042_v8 = vpop.f32.mrb[19].mxu1 }
 0x25e   :  { %1435 = vrot.lane.b32.xlu0 %v1007_v54, %s2561_s25 }
 0x260   :  { %1437 = vrot.lane.b32.xlu1 %v1010_v58, %s2561_s25 }
 0x261   :  { %v2315_v37 = vpop.f32.mrb[36].mxu0  ;;  %v2931_v9 = vpop.f32.mrb[20].mxu1 }
 0x262   :  { %1278 = vrot.lane.b32.xlu0 %v2307_v59, %s2562_s2  ;;  %v911_v10 = vpop.f32.mrb[37].mxu0  ;;  %v1055_v11 = vpop.f32.mrb[21].mxu1 }
 0x263   :  { %v2316_v30 = vpop.f32.mrb[38].mxu0  ;;  %v2934_v12 = vpop.f32.mrb[22].mxu1 }
 0x264   :  { %1280 = vrot.lane.b32.xlu1 %v2308_v1, %s2562_s2  ;;  %v914_v36 = vpop.f32.mrb[39].mxu0  ;;  %v1058_v13 = vpop.f32.mrb[23].mxu1 }
 0x266   :  { %1459 = vrot.lane.b32.xlu0 %v2343_v60, %s2563_s3 }
 0x268   :  { %1461 = vrot.lane.b32.xlu1 %v2344_v2, %s2563_s3  ;;  %v2513_v2 = vld [vmem:[%s3271_s5 + $0x40] sm:$0xff]  }
 0x269   :  { %v2319_v48 = vpop.f32.mrb[40].mxu0  ;;  %v2937_v14 = vpop.f32.mrb[24].mxu1  ;;  %2209 = vmatprep.subr.bf16.mxu0 %v2513_v2 }
 0x26a   :  { %1274 = vrot.lane.b32.xlu0 %v879_v61, %s2562_s2  ;;  %v927_v53 = vpop.f32.mrb[41].mxu0  ;;  %v1071_v15 = vpop.f32.mrb[25].mxu1 }
 0x26b   :  { %v2320_v46 = vpop.f32.mrb[42].mxu0  ;;  %v2940_v16 = vpop.f32.mrb[26].mxu1 }
 0x26c   :  { %1276 = vrot.lane.b32.xlu1 %v882_v3, %s2562_s2  ;;  %v930_v52 = vpop.f32.mrb[43].mxu0  ;;  %v1074_v0 = vpop.f32.mrb[27].mxu1  ;;  %v2514_v3 = vld [vmem:[%s3271_s5] sm:$0xff]  }
 0x26d   :  { %2210 = vmatpush3.bf16.msra.mxu0 %v2514_v3  ;;  %v2526_v3 = vld [vmem:[%s3271_s5 + $0x30] sm:$0xff]  }
 0x26e   :  { %1455 = vrot.lane.b32.xlu0 %v1023_v63, %s2563_s3 }
 0x270   :  { %1457 = vrot.lane.b32.xlu1 %v1026_v5, %s2563_s3  ;;  %s2572_s3 = smov [#allocation2]  }
 0x271   :  { %v2943_v17 = vpop.f32.mrb[28].mxu1  ;;  %v2323_v22 = vpop.f32.mrb[44].mxu0 }
 0x272   :  { %1298 = vrot.lane.b32.xlu0 %v2311_v19, %s2564_s26  ;;  %v943_v23 = vpop.f32.mrb[45].mxu0  ;;  %v2946_v24 = vpop.f32.mrb[29].mxu1 }
 0x273   :  { %v2948_v25 = vpop.f32.mrb[30].mxu1  ;;  %v2324_v26 = vpop.f32.mrb[46].mxu0 }
 0x274   :  { %1300 = vrot.lane.b32.xlu1 %v2312_v20, %s2564_s26  ;;  %v946_v27 = vpop.f32.mrb[47].mxu0  ;;  %v2951_v29 = vpop.f32.mrb[31].mxu1 }
 0x276   :  { %1479 = vrot.lane.b32.xlu0 %v2347_v21, %s2565_s27 }
 0x278   :  { %1481 = vrot.lane.b32.xlu1 %v2348_v7, %s2565_s27 }
 0x279   :  { %v2363_v33 = vpop.f32.mrb[32].mxu1  ;;  %v2327_v35 = vpop.f32.mrb[48].mxu0 }
 0x27a   :  { %1294 = vrot.lane.b32.xlu0 %v895_v18, %s2564_s26  ;;  %v1103_v39 = vpop.f32.mrb[33].mxu1  ;;  %v2954_v40 = vpop.f32.mrb[49].mxu0 }
 0x27b   :  { %v2364_v41 = vpop.f32.mrb[34].mxu1  ;;  %v2328_v42 = vpop.f32.mrb[50].mxu0 }
 0x27c   :  { %1296 = vrot.lane.b32.xlu1 %v898_v32, %s2564_s26  ;;  %v1106_v43 = vpop.f32.mrb[35].mxu1  ;;  %v2957_v44 = vpop.f32.mrb[51].mxu0 }
 0x27e   :  { %1475 = vrot.lane.b32.xlu0 %v1039_v6, %s2565_s27 }
 0x280   :  { %1477 = vrot.lane.b32.xlu1 %v1042_v8, %s2565_s27 }
 0x281   :  { %v2959_v47 = vpop.f32.mrb[36].mxu1 }
 0x282   :  { %1319 = vrot.lane.b32.xlu0 %v2315_v37, %s2566_s28  ;;  %v2962_v49 = vpop.f32.mrb[37].mxu1 }
 0x283   :  { %v2964_v62 = vpop.f32.mrb[38].mxu1 }
 0x284   :  { %1321 = vrot.lane.b32.xlu1 %v2316_v30, %s2566_s28  ;;  %v2967_v4 = vpop.f32.mrb[39].mxu1 }
 0x286   :  { %1315 = vrot.lane.b32.xlu0 %v911_v10, %s2566_s28  ;;  %v2515_v10 = vld [vmem:[%s3271_s5 + $0x48] sm:$0xff]  }
 0x287   :  { %2211 = vmatprep.subr.bf16.mxu0 %v2515_v10 }
 0x288   :  { %1317 = vrot.lane.b32.xlu1 %v914_v36, %s2566_s28 }
 0x289   :  { %v2971_v50 = vpop.f32.mrb[40].mxu1 }
 0x28a   :  { %1495 = vrot.lane.b32.xlu0 %v1055_v11, %s2567_s29  ;;  %v2974_v51 = vpop.f32.mrb[41].mxu1  ;;  %v2516_v11 = vld [vmem:[%s3271_s5 + $0x8] sm:$0xff]  }
 0x28b   :  { %v2976_v54 = vpop.f32.mrb[42].mxu1  ;;  %2212 = vmatpush3.bf16.msra.mxu0 %v2516_v11  ;;  %v2528_v11 = vld [vmem:[%s3271_s5 + $0x38] sm:$0xff]  }
 0x28c   :  { %1497 = vrot.lane.b32.xlu1 %v1058_v13, %s2567_s29  ;;  %v2979_v55 = vpop.f32.mrb[43].mxu1  ;;  %v2517_v13 = vld [vmem:[%s3271_s5 + $0x50] sm:$0xff]  }
 0x28d   :  { %2213 = vmatprep.subr.bf16.mxu0 %v2517_v13 }
 0x28e   :  { %1339 = vrot.lane.b32.xlu0 %v2319_v48, %s2568_s30 }
 0x290   :  { %1341 = vrot.lane.b32.xlu1 %v2320_v46, %s2568_s30 }
 0x291   :  { %v2983_v56 = vpop.f32.mrb[44].mxu1 }
 0x292   :  { %1335 = vrot.lane.b32.xlu0 %v927_v53, %s2568_s30  ;;  %v2986_v57 = vpop.f32.mrb[45].mxu1 }
 0x293   :  { %v2988_v58 = vpop.f32.mrb[46].mxu1 }
 0x294   :  { %1337 = vrot.lane.b32.xlu1 %v930_v52, %s2568_s30  ;;  %v2991_v59 = vpop.f32.mrb[47].mxu1 }
 0x296   :  { %1515 = vrot.lane.b32.xlu0 %v1071_v15, %s2569_s10  ;;  %v2518_v15 = vld [vmem:[%s3271_s5 + $0x10] sm:$0xff]  }
 0x297   :  { %2214 = vmatpush3.bf16.msra.mxu0 %v2518_v15 }
 0x298   :  { %1517 = vrot.lane.b32.xlu1 %v1074_v0, %s2569_s10 }
 0x299   :  { %v2995_v60 = vpop.f32.mrb[48].mxu1 }
 0x29a   :  { %1359 = vrot.lane.b32.xlu0 %v2323_v22, %s2570_s11  ;;  %v2998_v61 = vpop.f32.mrb[49].mxu1 }
 0x29b   :  { %v3000_v63 = vpop.f32.mrb[50].mxu1 }
 0x29c   :  { %1361 = vrot.lane.b32.xlu1 %v2324_v26, %s2570_s11  ;;  %v3003_v1 = vpop.f32.mrb[51].mxu1 }
 0x29e   :  { %1355 = vrot.lane.b32.xlu0 %v943_v23, %s2570_s11 }
 0x2a0   :  { %1357 = vrot.lane.b32.xlu1 %v946_v27, %s2570_s11 }
 0x2a1   :  { %v3013_v5 = vpop.f32.mrb[52].mxu1 }
 0x2a2   :  { %1539 = vrot.lane.b32.xlu0 %v2363_v33, %s2558_s4  ;;  %v3016_v19 = vpop.f32.mrb[53].mxu1  ;;  %v2519_v33 = vld [vmem:[%s3271_s5 + $0x58] sm:$0xff]  }
 0x2a3   :  { %v3018_v21 = vpop.f32.mrb[54].mxu1  ;;  %2215 = vmatprep.subr.bf16.mxu0 %v2519_v33 }
 0x2a4   :  { %1541 = vrot.lane.b32.xlu1 %v2364_v41, %s2558_s4  ;;  %v3021_v18 = vpop.f32.mrb[55].mxu1 }
 0x2a6   :  { %1379 = vrot.lane.b32.xlu0 %v2327_v35, %s2571_s15 }
 0x2a8   :  { %1381 = vrot.lane.b32.xlu1 %v2328_v42, %s2571_s15 }
 0x2a9   :  { %v3025_v6 = vpop.f32.mrb[56].mxu1 }
 0x2aa   :  { %1535 = vrot.lane.b32.xlu0 %v1103_v39, %s2558_s4  ;;  %v3028_v20 = vpop.f32.mrb[57].mxu1 }
 0x2ab   :  { %v3030_v7 = vpop.f32.mrb[58].mxu1 }
 0x2ac   :  { %v3032_v32 = vpop.permute.xlu0 %1399  ;;  %1537 = vrot.lane.b32.xlu1 %v1106_v43, %s2558_s4  ;;  %v3035_v8 = vpop.f32.mrb[59].mxu1 }
 0x2ae   :  { %v3037_v37 = vpop.permute.xlu1 %1401  ;;  %1375 = vrot.lane.b32.xlu0 %v2954_v40, %s2571_s15 }
 0x2b0   :  { %v3047_v30 = vpop.permute.xlu0 %1395  ;;  %1377 = vrot.lane.b32.xlu1 %v2957_v44, %s2571_s15  ;;  %v2522_v44 = vld [vmem:[%s3271_s5 + $0x20] sm:$0xff]  }
 0x2b1   :  { %v3051_v36 = vpop.f32.mrb[60].mxu1 }
 0x2b2   :  { %v3056_v48 = vpop.permute.xlu1 %1397  ;;  %1559 = vrot.lane.b32.xlu0 %v2959_v47, %s2560_s24  ;;  %v3060_v53 = vpop.f32.mrb[61].mxu1 }
 0x2b3   :  { %v3065_v46 = vpop.f32.mrb[62].mxu1 }
 0x2b4   :  { %v1239_v52 = vpop.permute.xlu0 %1238  ;;  %1561 = vrot.lane.b32.xlu1 %v2964_v62, %s2560_s24  ;;  %v3069_v0 = vpop.f32.mrb[63].mxu1 }
 0x2b5   :  { %v1248_v22 = vadd.f32 %v2915_v28, %v1239_v52  ;;  %v2520_v28 = vld [vmem:[%s3271_s5 + $0x18] sm:$0xff]  }
 0x2b6   :  { %v1241_v23 = vpop.permute.xlu1 %1240  ;;  %1555 = vrot.lane.b32.xlu0 %v2962_v49, %s2560_s24  ;;  %2216 = vmatpush3.bf16.msra.mxu0 %v2520_v28 }
 0x2b7   :  { %v1249_v26 = vadd.f32 %v2919_v34, %v1241_v23 }
 0x2b8   :  { %v3075_v27 = vpop.permute.xlu0 %1419  ;;  %1557 = vrot.lane.b32.xlu1 %v2967_v4, %s2560_s24  ;;  %s2041_s24 = sshll.u32 %s2572_s3, 4  ;;  %s2042_s24 = int_to_ptr.vmem [resolvable:$true] %s2041_s24 }
 0x2b9   :  { %s2533_s27 = scalar_lea.vmem %s2042_s24, 128  ;;  %p2538_p1 = scmp.lt.s32.totalorder %s2042_s24, %s2042_s24 }
 0x2ba   :  { %v3082_v35 = vpop.permute.xlu1 %1421  ;;  %1579 = vrot.lane.b32.xlu0 %v2971_v50, %s2562_s2  ;;  %p2534_p0 = scmp.ne.s32.totalorder %s2042_s24, %s2533_s27  ;;  %p2539_p2 = scmp.lt.s32.totalorder %s2533_s27, %s2533_s27 }
 0x2bc   :  { %v1235_v34 = vpop.permute.xlu0 %1234  ;;  %1581 = vrot.lane.b32.xlu1 %v2976_v54, %s2562_s2  ;;  %p2540_p3 = por %p2539_p2, %p2538_p1 }
 0x2bd   :  { %v1246_v39 = vadd.f32 %v1235_v34, %v2917_v31  ;;  %v2521_v31 = vld [vmem:[%s3271_s5 + $0x60] sm:$0xff]  }
 0x2be   :  { %v3092_v40 = vpop.permute.xlu1 %1417  ;;  %1575 = vrot.lane.b32.xlu0 %v2974_v51, %s2562_s2  ;;  %2217 = vmatprep.subr.bf16.mxu0 %v2521_v31  ;;  %p2541_p4 = pnand %p2540_p3, %p2534_p0 }
 0x2bf   :  { %2218 = vmatpush3.bf16.msra.mxu0 %v2522_v44 }
 0x2c0   :  { %v3096_v41 = vpop.permute.xlu0 %1415  ;;  %1577 = vrot.lane.b32.xlu1 %v2979_v55, %s2562_s2 }
 0x2c2   :  { %v1255_v42 = vpop.permute.xlu1 %1254  ;;  %1599 = vrot.lane.b32.xlu0 %v2983_v56, %s2564_s26  ;;  %v2524_v56 = vld [vmem:[%s3271_s5 + $0x28] sm:$0xff]  }
 0x2c3   :  { %v1266_v43 = vadd.f32 %v1255_v42, %v1246_v39 }
 0x2c4   :  { %v1237_v47 = vpop.permute.xlu0 %1236  ;;  %1601 = vrot.lane.b32.xlu1 %v2988_v58, %s2564_s26 }
 0x2c5   :  { %v1247_v49 = vadd.f32 %v1237_v47, %v2921_v38  ;;  %v2523_v38 = vld [vmem:[%s3271_s5 + $0x68] sm:$0xff]  }
 0x2c6   :  { %v1261_v62 = vpop.permute.xlu1 %1260  ;;  %1595 = vrot.lane.b32.xlu0 %v2986_v57, %s2564_s26  ;;  %2219 = vmatprep.subr.bf16.mxu0 %v2523_v38 }
 0x2c7   :  { %v1269_v4 = vadd.f32 %v1261_v62, %v1249_v26  ;;  %2220 = vmatpush3.bf16.msra.mxu0 %v2524_v56 }
 0x2c8   :  { %v1259_v50 = vpop.permute.xlu0 %1258  ;;  %1597 = vrot.lane.b32.xlu1 %v2991_v59, %s2564_s26 }
 0x2c9   :  { %v1268_v51 = vadd.f32 %v1259_v50, %v1248_v22 }
 0x2ca   :  { %v3115_v54 = vpop.permute.xlu1 %1441  ;;  %1619 = vrot.lane.b32.xlu0 %v2995_v60, %s2566_s28 }
 0x2cc   :  { %v3122_v55 = vpop.permute.xlu0 %1439  ;;  %1621 = vrot.lane.b32.xlu1 %v3000_v63, %s2566_s28  ;;  %v2525_v63 = vld [vmem:[%s3271_s5 + $0x70] sm:$0xff]  }
 0x2cd   :  { %2221 = vmatprep.subr.bf16.mxu0 %v2525_v63 }
 0x2ce   :  { %v1257_v57 = vpop.permute.xlu1 %1256  ;;  %1615 = vrot.lane.b32.xlu0 %v2998_v61, %s2566_s28  ;;  %2222 = vmatpush3.bf16.msra.mxu0 %v2526_v3 }
 0x2cf   :  { %v1267_v58 = vadd.f32 %v1257_v57, %v1247_v49 }
 0x2d0   :  { %v3131_v59 = vpop.permute.xlu0 %1435  ;;  %1617 = vrot.lane.b32.xlu1 %v3003_v1, %s2566_s28 }
 0x2d2   :  { %v3135_v60 = vpop.permute.xlu1 %1437  ;;  %1639 = vrot.lane.b32.xlu0 %v3013_v5, %s2568_s30 }
 0x2d4   :  { %v1279_v2 = vpop.permute.xlu0 %1278  ;;  %1641 = vrot.lane.b32.xlu1 %v3018_v21, %s2568_s30  ;;  %v2527_v21 = vld [vmem:[%s3271_s5 + $0x78] sm:$0xff]  }
 0x2d5   :  { %v1288_v61 = vadd.f32 %v1279_v2, %v1268_v51  ;;  %2223 = vmatprep.subr.bf16.mxu0 %v2527_v21 }
 0x2d6   :  { %v1281_v1 = vpop.permute.xlu1 %1280  ;;  %1635 = vrot.lane.b32.xlu0 %v3016_v19, %s2568_s30  ;;  %2224 = vmatpush3.bf16.msra.mxu0 %v2528_v11 }
 0x2d7   :  { %v1289_v10 = vadd.f32 %v1281_v1, %v1269_v4 }
 0x2d8   :  { %v3149_v5 = vpop.permute.xlu0 %1459  ;;  %1637 = vrot.lane.b32.xlu1 %v3021_v18, %s2568_s30 }
 0x2da   :  { %v3159_v13 = vpop.permute.xlu1 %1461  ;;  %1659 = vrot.lane.b32.xlu0 %v3025_v6, %s2570_s11 }
 0x2dc   :  { %v1275_v19 = vpop.permute.xlu0 %1274  ;;  %1661 = vrot.lane.b32.xlu1 %v3030_v7, %s2570_s11 }
 0x2dd   :  { %v1286_v18 = vadd.f32 %v1275_v19, %v1266_v43 }
 0x2de   :  { %v1277_v15 = vpop.permute.xlu1 %1276  ;;  %1655 = vrot.lane.b32.xlu0 %v3028_v20, %s2570_s11 }
 0x2df   :  { %v1287_v52 = vadd.f32 %v1277_v15, %v1267_v58 }
 0x2e0   :  { %v3167_v22 = vpop.permute.xlu0 %1455  ;;  %1657 = vrot.lane.b32.xlu1 %v3035_v8, %s2570_s11 }
 0x2e2   :  { %v3171_v23 = vpop.permute.xlu1 %1457  ;;  %1675 = vrot.lane.b32.xlu0 %v3060_v53, %s2571_s15 }
 0x2e4   :  { %v1299_v6 = vpop.permute.xlu0 %1298  ;;  %1677 = vrot.lane.b32.xlu1 %v3069_v0, %s2571_s15 }
 0x2e5   :  { %v1309_v7 = vadd.f32 %v1299_v6, %v1288_v61 }
 0x2e6   :  { %v1301_v26 = vpop.permute.xlu1 %1300  ;;  %1499 = vrot.lane.b32.xlu0 %v2931_v9, %s2567_s29 }
 0x2e7   :  { %v1310_v20 = vadd.f32 %v1301_v26, %v1289_v10 }
 0x2e8   :  { %v1480_v33 = vpop.permute.xlu0 %1479  ;;  %1501 = vrot.lane.b32.xlu1 %v2934_v12, %s2567_s29 }
 0x2ea   :  { %v3181_v8 = vpop.permute.xlu1 %1481  ;;  %1679 = vrot.lane.b32.xlu0 %v3051_v36, %s2571_s15 }
 0x2ec   :  { %v1295_v53 = vpop.permute.xlu0 %1294  ;;  %1681 = vrot.lane.b32.xlu1 %v3065_v46, %s2571_s15 }
 0x2ed   :  { %v1307_v0 = vadd.f32 %v1295_v53, %v1286_v18 }
 0x2ee   :  { %v1297_v28 = vpop.permute.xlu1 %1296  ;;  %1519 = vrot.lane.b32.xlu0 %v2937_v14, %s2569_s10 }
 0x2ef   :  { %v1308_v9 = vadd.f32 %v1297_v28, %v1287_v52 }
 0x2f0   :  { %v3189_v34 = vpop.permute.xlu0 %1475  ;;  %1521 = vrot.lane.b32.xlu1 %v2940_v16, %s2569_s10 }
 0x2f2   :  { %v3193_v12 = vpop.permute.xlu1 %1477 }
 0x2f4   :  { %v1320_v39 = vpop.permute.xlu0 %1319 }
 0x2f5   :  { %v1329_v42 = vadd.f32 %v1320_v39, %v1309_v7 }
 0x2f6   :  { %v1322_v36 = vpop.permute.xlu1 %1321 }
 0x2f7   :  { %v1330_v43 = vadd.f32 %v1322_v36, %v1310_v20 }
 0x2f8   :  { %v1316_v31 = vpop.permute.xlu0 %1315 }
 0x2f9   :  { %v1327_v44 = vadd.f32 %v1316_v31, %v1307_v0 }
 0x2fa   :  { %v1318_v46 = vpop.permute.xlu1 %1317 }
 0x2fb   :  { %v1328_v47 = vadd.f32 %v1318_v46, %v1308_v9 }
 0x2fc   :  { %v1496_v49 = vpop.permute.xlu0 %1495 }
 0x2fe   :  { %v1498_v62 = vpop.permute.xlu1 %1497 }
 0x300   :  { %v1340_v4 = vpop.permute.xlu0 %1339 }
 0x301   :  { %v1349_v14 = vadd.f32 %v1340_v4, %v1329_v42 }
 0x302   :  { %v1342_v50 = vpop.permute.xlu1 %1341 }
 0x303   :  { %v1350_v51 = vadd.f32 %v1342_v50, %v1330_v43 }
 0x304   :  { %v1336_v38 = vpop.permute.xlu0 %1335 }
 0x305   :  { %v1347_v7 = vadd.f32 %v1336_v38, %v1327_v44 }
 0x306   :  { %v1338_v56 = vpop.permute.xlu1 %1337 }
 0x307   :  { %v1348_v0 = vadd.f32 %v1338_v56, %v1328_v47 }
 0x308   :  { %v1516_v57 = vpop.permute.xlu0 %1515 }
 0x30a   :  { %v1518_v16 = vpop.permute.xlu1 %1517 }
 0x30c   :  { %v1360_v58 = vpop.permute.xlu0 %1359 }
 0x30d   :  { %v1369_v63 = vadd.f32 %v1360_v58, %v1349_v14 }
 0x30e   :  { %v1362_v2 = vpop.permute.xlu1 %1361 }
 0x30f   :  { %v1370_v61 = vadd.f32 %v1362_v2, %v1350_v51 }
 0x310   :  { %v1356_v3 = vpop.permute.xlu0 %1355 }
 0x311   :  { %v1367_v28 = vadd.f32 %v1356_v3, %v1347_v7 }
 0x312   :  { %v1358_v1 = vpop.permute.xlu1 %1357 }
 0x313   :  { %v1368_v36 = vadd.f32 %v1358_v1, %v1348_v0 }
 0x314   :  { %v3195_v10 = vpop.permute.xlu0 %1539 }
 0x316   :  { %v3197_v21 = vpop.permute.xlu1 %1541 }
 0x318   :  { %v1380_v11 = vpop.permute.xlu0 %1379 }
 0x319   :  { %v1389_v19 = vadd.f32 %v1380_v11, %v1369_v63 }
 0x31a   :  { %v1382_v18 = vpop.permute.xlu1 %1381 }
 0x31b   :  { %v1409_v15 = vadd.f32 %v3032_v32, %v1389_v19  ;;  %v1390_v52 = vadd.f32 %v1382_v18, %v1370_v61 }
 0x31c   :  { %v1536_v6 = vpop.permute.xlu0 %1535 }
 0x31d   :  { %v1429_v26 = vadd.f32 %v3075_v27, %v1409_v15  ;;  %v1410_v20 = vadd.f32 %v3037_v37, %v1390_v52 }
 0x31e   :  { %v1538_v53 = vpop.permute.xlu1 %1537 }
 0x31f   :  { %v1430_v9 = vadd.f32 %v3082_v35, %v1410_v20  ;;  %v1449_v39 = vadd.f32 %v3122_v55, %v1429_v26 }
 0x320   :  { %v1376_v42 = vpop.permute.xlu0 %1375 }
 0x321   :  { %v1387_v43 = vadd.f32 %v1376_v42, %v1367_v28  ;;  %v1469_v31 = vadd.f32 %v3149_v5, %v1449_v39  ;;  %v1450_v32 = vadd.f32 %v3115_v54, %v1430_v9 }
 0x322   :  { %v1378_v46 = vpop.permute.xlu1 %1377 }
 0x323   :  { %v1407_v44 = vadd.f32 %v3047_v30, %v1387_v43  ;;  %v1388_v27 = vadd.f32 %v1378_v46, %v1368_v36  ;;  %v3207_v4 = vadd.f32 %v1480_v33, %v1469_v31  ;;  %v1470_v37 = vadd.f32 %v3159_v13, %v1450_v32 }
 0x324   :  { %v1560_v47 = vpop.permute.xlu0 %1559  ;;  %v1549_v36 = vadd.f32 %v2943_v17, %v3195_v10  ;;  %v1550_v43 = vadd.f32 %v2948_v25, %v3197_v21 }
 0x325   :  { %v1427_v35 = vadd.f32 %v3096_v41, %v1407_v44  ;;  %v1408_v55 = vadd.f32 %v3056_v48, %v1388_v27  ;;  %v3213_v14 = vadd.f32 %v3181_v8, %v1470_v37 }
 0x326   :  { %v1562_v50 = vpop.permute.xlu1 %1561 }
 0x327   :  { %v1447_v5 = vadd.f32 %v3131_v59, %v1427_v35  ;;  %v1428_v54 = vadd.f32 %v3092_v40, %v1408_v55 }
 0x328   :  { %v1556_v51 = vpop.permute.xlu0 %1555 }
 0x329   :  { %v1467_v30 = vadd.f32 %v3167_v22, %v1447_v5  ;;  %v1448_v33 = vadd.f32 %v3135_v60, %v1428_v54 }
 0x32a   :  { %v1558_v38 = vpop.permute.xlu1 %1557 }
 0x32b   :  { %v1487_v13 = vadd.f32 %v3189_v34, %v1467_v30  ;;  %v1468_v41 = vadd.f32 %v3171_v23, %v1448_v33 }
 0x32c   :  { %v1580_v56 = vpop.permute.xlu0 %1579 }
 0x32d   :  { %v1507_v48 = vadd.f32 %v1496_v49, %v1487_v13  ;;  %v1488_v8 = vadd.f32 %v3193_v12, %v1468_v41  ;;  %v1547_v12 = vadd.f32 %v1536_v6, %v2946_v24 }
 0x32e   :  { %v1582_v58 = vpop.permute.xlu1 %1581 }
 0x32f   :  { %v1508_v63 = vadd.f32 %v1498_v62, %v1488_v8  ;;  %v1527_v2 = vadd.f32 %v1516_v57, %v1507_v48  ;;  %v1548_v62 = vadd.f32 %v1538_v53, %v2951_v29  ;;  %v1567_v7 = vadd.f32 %v1556_v51, %v1547_v12 }
 0x330   :  { %v1576_v59 = vpop.permute.xlu0 %1575  ;;  %v1569_v29 = vadd.f32 %v1560_v47, %v1549_v36  ;;  %v1570_v53 = vadd.f32 %v1562_v50, %v1550_v43 }
 0x331   :  { %v1528_v61 = vadd.f32 %v1518_v16, %v1508_v63  ;;  %v1568_v16 = vadd.f32 %v1558_v38, %v1548_v62  ;;  %v1587_v20 = vadd.f32 %v1576_v59, %v1567_v7 }
 0x332   :  { %v1578_v40 = vpop.permute.xlu1 %1577  ;;  %v1589_v27 = vadd.f32 %v1580_v56, %v1569_v29  ;;  %v1590_v37 = vadd.f32 %v1582_v58, %v1570_v53 }
 0x333   :  { %v1691_v3 = vpack.c.bf16 %v1528_v61, %v1527_v2  ;;  %v1588_v0 = vadd.f32 %v1578_v40, %v1568_v16 }
 0x334   :  { %v1600_v1 = vpop.permute.xlu0 %1599 }
 0x335   :  { %v1609_v54 = vadd.f32 %v1600_v1, %v1589_v27 }
 0x336   :  { %v1602_v22 = vpop.permute.xlu1 %1601 }
 0x337   :  { %v1610_v51 = vadd.f32 %v1602_v22, %v1590_v37 }
 0x338   :  { %v1596_v11 = vpop.permute.xlu0 %1595 }
 0x339   :  { %v1607_v9 = vadd.f32 %v1596_v11, %v1587_v20 }
 0x33a   :  { %v1598_v60 = vpop.permute.xlu1 %1597 }
 0x33b   :  { %v1608_v39 = vadd.f32 %v1598_v60, %v1588_v0 }
 0x33c   :  { %v1620_v19 = vpop.permute.xlu0 %1619 }
 0x33d   :  { %v1629_v33 = vadd.f32 %v1620_v19, %v1609_v54 }
 0x33e   :  { %v1622_v18 = vpop.permute.xlu1 %1621 }
 0x33f   :  { %v1630_v25 = vadd.f32 %v1622_v18, %v1610_v51 }
 0x340   :  { %v1616_v34 = vpop.permute.xlu0 %1615 }
 0x341   :  { %v1627_v31 = vadd.f32 %v1616_v34, %v1607_v9 }
 0x342   :  { %v1618_v15 = vpop.permute.xlu1 %1617 }
 0x343   :  { %v1628_v24 = vadd.f32 %v1618_v15, %v1608_v39 }
 0x344   :  { %v1640_v23 = vpop.permute.xlu0 %1639 }
 0x345   :  { %v1649_v13 = vadd.f32 %v1640_v23, %v1629_v33 }
 0x346   :  { %v1642_v52 = vpop.permute.xlu1 %1641 }
 0x347   :  { %v1650_v47 = vadd.f32 %v1642_v52, %v1630_v25  ;;  %v1873_v25 = vld [vmem:[%s3273_s7] sm:$0x1] }
 0x348   :  { %v1636_v49 = vpop.permute.xlu0 %1635 }
 0x349   :  { %v1647_v32 = vadd.f32 %v1636_v49, %v1627_v31 }
 0x34a   :  { %v1638_v57 = vpop.permute.xlu1 %1637 }
 0x34b   :  { %v1648_v46 = vadd.f32 %v1638_v57, %v1628_v24 }
 0x34c   :  { %v1660_v26 = vpop.permute.xlu0 %1659 }
 0x34d   :  { %v1669_v41 = vadd.f32 %v1660_v26, %v1649_v13 }
 0x34e   :  { %v1662_v28 = vpop.permute.xlu1 %1661 }
 0x34f   :  { %v1670_v56 = vadd.f32 %v1662_v28, %v1650_v47 }
 0x350   :  { %v1656_v42 = vpop.permute.xlu0 %1655 }
 0x351   :  { %v1667_v35 = vadd.f32 %v1656_v42, %v1647_v32 }
 0x352   :  { %v1658_v6 = vpop.permute.xlu1 %1657 }
 0x353   :  { %v1668_v55 = vadd.f32 %v1658_v6, %v1648_v46 }
 0x354   :  { %v1676_v44 = vpop.permute.xlu0 %1675 }
 0x355   :  { %v1687_v30 = vadd.f32 %v1676_v44, %v1667_v35 }
 0x356   :  { %v1678_v5 = vpop.permute.xlu1 %1677 }
 0x357   :  { %v1688_v17 = vadd.f32 %v1678_v5, %v1668_v55 }
 0x358   :  { %v1500_v10 = vpop.permute.xlu0 %1499 }
 0x359   :  { %v1692_v21 = vpack.c.bf16 %v1688_v17, %v1687_v30  ;;  %v1509_v2 = vadd.f32 %v1500_v10, %v3207_v4  ;;  %v1872_v17 = vld [vmem:[%s3272_s6] sm:$0x1] }
 0x35a   :  { %v1502_v38 = vpop.permute.xlu1 %1501 }
 0x35b   :  { %1855 = vmatprep.mubr.bf16.mxu0 %v1692_v21  ;;  %v1510_v59 = vadd.f32 %v1502_v38, %v3213_v14 }
 0x35c   :  { %v1680_v50 = vpop.permute.xlu0 %1679  ;;  %1856 = vmatmul.mubr.bf16.vlgmr.msra.gmra.mrb[52].mxu0 %v1691_v3  ;;  %v1930_v3 = vld [vmem:[%s3274_s8] sm:$0xff] }
 0x35d   :  { %v1689_v8 = vadd.f32 %v1680_v50, %v1669_v41 }
 0x35e   :  { %v1682_v48 = vpop.permute.xlu1 %1681 }
 0x35f   :  { %v1690_v58 = vadd.f32 %v1682_v48, %v1670_v56 }
 0x360   :  { %v1520_v63 = vpop.permute.xlu0 %1519 }
 0x361   :  { %v1694_v61 = vpack.c.bf16 %v1690_v58, %v1689_v8  ;;  %v1529_v1 = vadd.f32 %v1520_v63, %v1509_v2 }
 0x362   :  { %v1522_v40 = vpop.permute.xlu1 %1521 }
 0x363   :  { %v1530_v22 = vadd.f32 %v1522_v40, %v1510_v59  ;;  %1863 = vmatprep.mubr.bf16.mxu0 %v1694_v61 }
 0x365   :  { %v1693_v11 = vpack.c.bf16 %v1530_v22, %v1529_v1 }
 0x367   :  { %1864 = vmatmul.mubr.bf16.gmra.mrb[56].mxu0 %v1693_v11 }
 0x368   :  { %2401 = vmatprep.mubr.msk.f32.mxu0 %vm1306_vm0, %v1930_v3  ;;  %v1931_v3 = vld [vmem:[%s3274_s8 + $0x8] sm:$0xff] }
 0x42f   :  { %v2225_v60 = vpop.f32.mrb[52].mxu0 }
 0x430   :  { %v2226_v19 = vpop.f32.mrb[53].mxu0 }
 0x431   :  { %v2227_v18 = vadd.f32 %v2226_v19, %v2225_v60  ;;  %v2228_v4 = vpop.f32.mrb[54].mxu0  ;;  %v1933_v60 = vld [vmem:[%s3274_s8 + $0x18] sm:$0xff] }
 0x432   :  { %v2229_v34 = vpop.f32.mrb[55].mxu0 }
 0x433   :  { %v2230_v14 = vadd.f32 %v2229_v34, %v2228_v4  ;;  %v1883_v15 = vmul.f32 %v2227_v18, %v2227_v18 }
 0x435   :  { %v1874_v23 = vadd.f32 %v2230_v14, %v2227_v18  ;;  %v1884_v52 = vmul.f32 %v2230_v14, %v2230_v14 }
 0x437   :  { %v1887_v49 = vadd.f32 %v1884_v52, %v1883_v15 }
 0x43a   :  { %v2231_v12 = vpop.f32.mrb[56].mxu0 }
 0x43b   :  { %v2232_v62 = vpop.f32.mrb[57].mxu0 }
 0x43c   :  { %v2233_v57 = vadd.f32 %v2232_v62, %v2231_v12  ;;  %v2234_v7 = vpop.f32.mrb[58].mxu0 }
 0x43d   :  { %v2235_v16 = vpop.f32.mrb[59].mxu0 }
 0x43e   :  { %v1875_v26 = vadd.f32 %v2233_v57, %v1874_v23  ;;  %v1885_v20 = vmul.f32 %v2233_v57, %v2233_v57  ;;  %v2236_v0 = vadd.f32 %v2235_v16, %v2234_v7 }
 0x440   :  { %v1888_v28 = vadd.f32 %v1887_v49, %v1885_v20  ;;  %v1876_v9 = vadd.f32 %v2236_v0, %v1875_v26  ;;  %v1886_v39 = vmul.f32 %v2236_v0, %v2236_v0 }
 0x442   :  { %v1877_v42 = vrot.slane %v1876_v9, 4  ;;  %v1889_v36 = vadd.f32 %v1888_v28, %v1886_v39 }
 0x444   :  { %v1878_v43 = vadd.f32 %v1877_v42, %v1876_v9  ;;  %v1890_v31 = vrot.slane %v1889_v36, 4 }
 0x446   :  { %v1879_v24 = vrot.slane %v1878_v43, 2  ;;  %v1891_v6 = vadd.f32 %v1890_v31, %v1889_v36 }
 0x448   :  { %v1880_v29 = vadd.f32 %v1879_v24, %v1878_v43  ;;  %v1892_v53 = vrot.slane %v1891_v6, 2 }
 0x44a   :  { %v1881_v32 = vrot.slane %v1880_v29, 1  ;;  %v1893_v46 = vadd.f32 %v1892_v53, %v1891_v6 }
 0x44c   :  { %v1882_v44 = vadd.f32 %v1881_v32, %v1880_v29  ;;  %v1894_v27 = vrot.slane %v1893_v46, 1 }
 0x44e   :  { %v1895_v37 = vadd.f32 %v1894_v27, %v1893_v46  ;;  %v1896_v35 = vmul.f32 0.03125, %v1882_v44 }
 0x450   :  { %v1897_v55 = vmul.f32 0.03125, %v1895_v37  ;;  %v1898_v5 = vmul.f32 %v1896_v35, %v1896_v35 }
 0x452   :  { %v1899_v54 = vsub.f32 %v1897_v55, %v1898_v5 }
 0x454   :  { %v1900_v51 = vmax.f32 %v1899_v54, 0.0 }
 0x456   :  { %v1901_v30 = vadd.f32 1e-05, %v1900_v51 }
 0x458   :  { %2531 = vrsqrt.f32 %v1901_v30 }
 0x462   :  { %v2532_v10 = vpop.eup %2531 }
 0x463   :  { %v1903_v33 = vmul.f32 %v2532_v10, %v1872_v17 }
 0x465   :  { %v1904_v21 = vmul.f32 %v1903_v33, %v1896_v35  ;;  %v1910_v38 = vrot.slane %v1903_v33, %v2750_v45 }
 0x467   :  { %v1905_v13 = vsub.f32 %v1873_v25, %v1904_v21  ;;  %v1915_v47 = vmul.f32 %v2236_v0, %v1910_v38  ;;  %v1912_v50 = vmul.f32 %v2227_v18, %v1910_v38  ;;  %v1913_v41 = vmul.f32 %v2230_v14, %v1910_v38 }
 0x468   :  { %v1914_v56 = vmul.f32 %v2233_v57, %v1910_v38 }
 0x469   :  { %v1920_v48 = vrot.slane %v1905_v13, %v2750_v45  ;;  %v1932_v45 = vld [vmem:[%s3274_s8 + $0x10] sm:$0xff] }
 0x46b   :  { %v1922_v8 = vadd.f32 %v1920_v48, %v1912_v50  ;;  %v1923_v58 = vadd.f32 %v1920_v48, %v1913_v41  ;;  %v1924_v63 = vadd.f32 %v1920_v48, %v1914_v56  ;;  %v1925_v2 = vadd.f32 %v1920_v48, %v1915_v47 }
 0x46d   :  { %v1926_v59 = vmax.f32 %v1922_v8, 0.0  ;;  %v1927_v61 = vmax.f32 %v1923_v58, 0.0  ;;  %v1928_v40 = vmax.f32 %v1924_v63, 0.0  ;;  %v1929_v1 = vmax.f32 %v1925_v2, 0.0 }
 0x46f   :  { %v2407_v22 = vpack.c.bf16 %v1927_v61, %v1926_v59  ;;  %v2411_v11 = vpack.c.bf16 %v1929_v1, %v1928_v40 }
 0x471   :  { %2408 = vmatprep.subr.bf16.mxu0 %v2407_v22 }
 0x472   :  { %2410 = vmatpush3.bf16.msra.mxu0 %v2407_v22 }
 0x473   :  { %2412 = vmatprep.subr.bf16.mxu0 %v2411_v11 }
 0x476   :  { %2414 = vmatpush3.bf16.msra.mxu0 %v2411_v11 }
 0x479   :  { %2402 = vmatmul.mubr.msk.f32.vlgmr.msra.gmra.mrb[60].mxu0 %vm1306_vm0, %v1931_v3 }
 0x47a   :  { %2404 = vmatprep.mubr.msk.f32.mxu0 %vm1306_vm0, %v1932_v45 }
 0x47d   :  { %2405 = vmatmul.mubr.msk.f32.gmra.mrb[62].mxu0 %vm1306_vm0, %v1933_v60 }
 0x54c   :  { %v2403_v19 = vpop.f32.mrb[60].mxu0 }
 0x54d   :  { %v2012_v18 = vpop.f32.mrb[61].mxu0 }
 0x54e   :  { %v2031_v4 = vmax.f32 %v2012_v18, %v2403_v19 }
 0x550   :  { %v2406_v34 = vpop.f32.mrb[62].mxu0 }
 0x551   :  { %v2022_v14 = vpop.f32.mrb[63].mxu0 }
 0x552   :  { %v2032_v15 = vmax.f32 %v2022_v14, %v2406_v34 }
 0x554   :  { %v2033_v23 = vmax.f32 %v2031_v4, %v2032_v15 }
 0x556   :  { %2034 = vst [vmem:[#allocation2] sm:$0xff] %v2033_v23 }
 0x557   :  { %2544 = shalt.err (!%p2541_p4)
}
 0x558   :  { %s2545_s12 = scalar_lea.hbm %s3275_s9, 128 }
 0x559   :  { %p2546_p5 = scmp.ne.s32.totalorder %s3275_s9, %s2545_s12  ;;  %p2549_p6 = scmp.lt.u32.totalorder %s2545_s12, %s3275_s9 }
 0x55b   :  { %p2551_p7 = pnand %p2549_p6, %p2546_p5 }
 0x55d   :  { %2554 = shalt.err (!%p2551_p7)
}
 0x55e   :  { %2044 = dma.vmem_to_hbm [thread:$0]  %s2042_s24, 128, %s3275_s9, [#allocation3]  }
 0x55f   :  { %2555 = dma.done.wait [#allocation3], 128  }
 0x560   :  { %2556 = vsyncadd [#allocation3], 4294967168 }
 0x561   :  { %2048 = vsyncpa [#allocation3], 1 }

</bundles_post_ra>
